<compile_context>
chip_gen: v7x
topology: tpu7x:2x2x1
jax: 0.10.0
libtpu: 0.0.40
codegen_flags: <defaults>
</compile_context>

<pallas_src>
import functools

import jax
import jax.numpy as jnp
from jax.experimental import pallas as pl
from jax.experimental.pallas import tpu as pltpu

# Logical sizes from the PyTorch module.
IN_DIM = 2
HID = 50
OUT_DIM = 1
N_MID = 4            # f3..f6 (50 -> 50) layers

# TPU layout constants.
LANE = 128
SUB = 8

# Batch tile: 2048 default; sweep 2048-8192 on v6e/v7x.
DEFAULT_TILE = 2048


def _round_up(n, m):
    return ((n + m - 1) // m) * m


def _device_kind():
    try:
        return jax.devices()[0].device_kind.lower()
    except Exception:
        return ""


def _default_act_dtype():
    # v6e / v7x have bf16 VPU/EUP -> pointwise bias-add/sin in bf16 runs on
    # packed [16,128] vregs (~2x).  v5e has no bf16 pointwise path -> f32.
    k = _device_kind()
    if ("v6" in k) or ("v7" in k) or ("tpu7" in k):
        return jnp.bfloat16
    return jnp.float32


def _default_min_grid():
    # v7x has 2 TensorCores/chip: make sure the "parallel" batch axis has at
    # least 2 grid steps so both cores get work.  No-op on v5e/v6e.
    k = _device_kind()
    return 2 if (("v7" in k) or ("tpu7" in k)) else 1


def fnn_kernel(x_ref, w2_ref, b2_ref, ws_ref, bs_ref, w7_ref, b7_ref, o_ref,
               *, act_dtype):
    """Fused forward pass for one batch tile.

    x_ref : [TB, 2]            f32   (real, un-padded input features)
    w2_ref: [2, 128]           f32   (f2 weight, lane-padded 50->128)
    b2_ref: [1, 128]           f32
    ws_ref: [4, 128, 128]      f32/bf16 (stacked f3..f6 weights, zero-padded)
    bs_ref: [4, 128]           f32   (stacked f3..f6 biases, zero-padded)
    w7_ref: [1, 128]           f32   (f7's single real output column)
    b7_ref: [1, 1]             f32
    o_ref : [TB, 1]            f32
    """
    x = x_ref[...]                                       # [TB, 2] f32

    # f2 (2 -> 50/128): two VPU broadcast-FMAs; avoids a tiny-K matmul and
    # avoids shipping a lane-padded input from HBM.
    h0 = (x[:, 0:1] * w2_ref[0:1, :]
          + x[:, 1:2] * w2_ref[1:2, :]
          + b2_ref[...])                                 # [TB, 128] f32
    # TODO(synk): jnp.sin has no native EUP path (range-reduction + polynomial
    # on the VPU); if profiling confirms sin is the saturated slot, swap in a
    # fixed-range polynomial exploiting the bounded activation domain.
    h = jnp.sin(h0.astype(act_dtype))

    mm_dtype = ws_ref.dtype
    # f3..f6: MXU matmul with f32 accumulation -> bias -> sin (act_dtype).
    for l in range(N_MID):
        acc = jnp.dot(h.astype(mm_dtype), ws_ref[l],
                      preferred_element_type=jnp.float32)       # [TB, 128] f32
        h = jnp.sin(acc.astype(act_dtype)
                    + bs_ref[l:l + 1, :].astype(act_dtype))

    # f7 (50 -> 1): only one real output column, so do a VPU multiply +
    # cross-lane (XLU) reduce instead of a 128-wide matmul whose 127 padded
    # output columns would be discarded.
    hf = h.astype(jnp.float32)
    out = jnp.sum(hf * w7_ref[...], axis=-1, keepdims=True) + b7_ref[...]
    # NOTE: [TB,1] store uses masked vst per sublane group; switch to a
    # lane-dense (1,1,TB) output layout only if a bundle dump shows the
    # epilogue is vst.msk-bound (review: measure first).
    o_ref[...] = out


def _prepare_params(params, mm_dtype):
    """Pad / stack the 6 (W, b) pairs into 6 kernel arguments."""
    w2, b2 = params[0]
    w2_p = jnp.pad(w2.astype(jnp.float32), ((0, 0), (0, LANE - HID)))           # [2,128]
    b2_p = jnp.pad(b2.astype(jnp.float32)[None, :], ((0, 0), (0, LANE - HID)))  # [1,128]

    ws, bs = [], []
    for w, b in params[1:1 + N_MID]:
        ws.append(jnp.pad(w.astype(jnp.float32),
                          ((0, LANE - w.shape[0]), (0, LANE - w.shape[1]))))
        bs.append(jnp.pad(b.astype(jnp.float32), ((0, LANE - b.shape[0]),)))
    ws = jnp.stack(ws).astype(mm_dtype)    # [4,128,128] MXU dtype
    bs = jnp.stack(bs)                     # [4,128] f32

    w7, b7 = params[-1]
    w7_p = jnp.pad(w7.astype(jnp.float32)[:, 0], ((0, LANE - HID),))[None, :]   # [1,128]
    b7_p = b7.astype(jnp.float32).reshape(1, 1)                                 # [1,1]
    return w2_p, b2_p, ws, bs, w7_p, b7_p


@functools.partial(jax.jit,
                   static_argnames=("tile", "mm_dtype", "act_dtype", "min_grid"))
def _fnn_forward(x, params, *, tile, mm_dtype, act_dtype, min_grid):
    B = x.shape[0]
    B_pad = _round_up(max(B, 1), SUB)
    tb = min(_round_up(tile, SUB), B_pad)
    if min_grid > 1 and B_pad >= min_grid * SUB:
        # Guarantee >= min_grid grid steps (v7x: use both TensorCores).
        tb = min(tb, _round_up(pl.cdiv(B_pad, min_grid), SUB))
    B_pad = _round_up(B_pad, tb)
    nb = B_pad // tb

    x_p = jnp.pad(x.astype(jnp.float32), ((0, B_pad - B), (0, 0)))  # [B_pad, 2]
    w2_p, b2_p, ws, bs, w7_p, b7_p = _prepare_params(params, mm_dtype)

    # Advisory cost estimate (real work only).
    flops = nb * tb * (2 * IN_DIM * LANE + N_MID * 2 * LANE * LANE + 2 * LANE)
    transcendentals = nb * tb * (N_MID + 1) * HID
    bytes_accessed = int(x_p.size * 4 + B_pad * OUT_DIM * 4
                         + w2_p.size * 4 + b2_p.size * 4
                         + ws.size * ws.dtype.itemsize + bs.size * 4
                         + w7_p.size * 4 + b7_p.size * 4)
    cost = pl.CostEstimate(flops=int(flops),
                           transcendentals=int(transcendentals),
                           bytes_accessed=bytes_accessed)

    # Keep within v5e's 16 MiB scoped-VMEM default when possible; raise the
    # limit only for very large tiles (x/out blocks lane-pad to 128 in VMEM).
    weight_bytes = ((w2_p.size + b2_p.size + bs.size + w7_p.size + b7_p.size) * 4
                    + ws.size * ws.dtype.itemsize)
    est_vmem = 4 * tb * LANE * 4 + 2 * weight_bytes + 8 * tb * LANE * 4
    vmem_limit = (None if est_vmem <= (14 << 20)
                  else int(min(max(est_vmem, 32 << 20), 64 << 20)))

    kernel = functools.partial(fnn_kernel, act_dtype=act_dtype)

    out = pl.pallas_call(
        kernel,
        out_shape=jax.ShapeDtypeStruct((B_pad, OUT_DIM), jnp.float32),
        grid=(nb,),
        in_specs=[
            pl.BlockSpec((tb, IN_DIM), lambda i: (i, 0)),            # x: batch-tiled
            pl.BlockSpec((IN_DIM, LANE), lambda i: (0, 0)),          # w2: VMEM-resident
            pl.BlockSpec((1, LANE), lambda i: (0, 0)),               # b2
            pl.BlockSpec((N_MID, LANE, LANE), lambda i: (0, 0, 0)),  # stacked w3..w6
            pl.BlockSpec((N_MID, LANE), lambda i: (0, 0)),           # stacked b3..b6
            pl.BlockSpec((1, LANE), lambda i: (0, 0)),               # w7 column
            pl.BlockSpec((1, 1), lambda i: (0, 0)),                  # b7
        ],
        out_specs=pl.BlockSpec((tb, OUT_DIM), lambda i: (i, 0)),
        compiler_params=pltpu.CompilerParams(
            dimension_semantics=("parallel",),
            vmem_limit_bytes=vmem_limit),
        cost_estimate=cost,
    )(x_p, w2_p, b2_p, ws, bs, w7_p, b7_p)

    return out[:B, :]


def fnn_forward(x, params, *, tile=DEFAULT_TILE, mm_dtype=jnp.bfloat16,
                act_dtype=None, min_grid=None):
    """x: [B, 2] float32. params: list of 6 (W_[in,out], b_[out]) pairs."""
    if act_dtype is None:
        act_dtype = _default_act_dtype()
    if min_grid is None:
        min_grid = _default_min_grid()
    return _fnn_forward(x, params, tile=int(tile), mm_dtype=mm_dtype,
                        act_dtype=act_dtype, min_grid=int(min_grid))


def init_params(key):
    """Deterministic init mimicking nn.Linear's U(-1/sqrt(fan_in), 1/sqrt(fan_in))."""
    dims = [(IN_DIM, HID)] + [(HID, HID)] * N_MID + [(HID, OUT_DIM)]
    params = []
    for fan_in, fan_out in dims:
        key, kw, kb = jax.random.split(key, 3)
        bound = 1.0 / jnp.sqrt(fan_in)
        w = jax.random.uniform(kw, (fan_in, fan_out), jnp.float32, -bound, bound)
        b = jax.random.uniform(kb, (fan_out,), jnp.float32, -bound, bound)
        params.append((w, b))
    return params


def fnn_reference(x, params):
    h = x
    for i, (w, b) in enumerate(params):
        h = jnp.dot(h, w, precision=jax.lax.Precision.HIGHEST) + b
        if i < len(params) - 1:
            h = jnp.sin(h)
    return h


if __name__ == "__main__":
    key = jax.random.PRNGKey(0)
    key, kx1, kx2 = jax.random.split(key, 3)
    params = init_params(key)

    # 1) Small batch, full-f32 path: strict check against the pure-JAX reference.
    B1 = 16
    x1 = jax.random.normal(kx1, (B1, IN_DIM), jnp.float32)
    y1 = fnn_forward(x1, params, mm_dtype=jnp.float32, act_dtype=jnp.float32)
    jax.block_until_ready(y1)
    y1_ref = fnn_reference(x1, params)
    assert y1.shape == (B1, OUT_DIM), y1.shape
    assert jnp.allclose(y1, y1_ref, atol=2e-4, rtol=2e-4)

    # 2) Multiple batch tiles + batch padding (small tile forces several grid steps).
    B2 = 200
    x2 = jax.random.normal(kx2, (B2, IN_DIM), jnp.float32)
    y2_ref = fnn_reference(x2, params)
    y2 = fnn_forward(x2, params, tile=64, mm_dtype=jnp.float32, act_dtype=jnp.float32)
    jax.block_until_ready(y2)
    assert y2.shape == (B2, OUT_DIM), y2.shape
    assert jnp.allclose(y2, y2_ref, atol=2e-4, rtol=2e-4)

    # 3) Production default matmul path: bf16 MXU operands, f32 accumulation/pointwise.
    y3 = fnn_forward(x2, params, tile=64, mm_dtype=jnp.bfloat16, act_dtype=jnp.float32)
    jax.block_until_ready(y3)
    assert jnp.allclose(y3, y2_ref, atol=5e-2, rtol=5e-2)

    # 4) bf16 pointwise path (v6e/v7x optimization): best-effort — fall back
    #    silently if this chip's lowering doesn't support bf16 sin.
    try:
        y4 = fnn_forward(x2, params, tile=64, mm_dtype=jnp.bfloat16,
                         act_dtype=jnp.bfloat16)
        jax.block_until_ready(y4)
        assert jnp.allclose(y4, y2_ref, atol=1.5e-1, rtol=1e-1)
    except Exception:
        pass

    print("KERNEL_OK")
</pallas_src>

<mosaic_0001>
module attributes {stable_mosaic.version = 11 : i64} {
  func.func @fnn_kernel(%arg0: i32, %arg1: memref<16x2xf32, #tpu.memory_space<vmem>>, %arg2: memref<2x128xf32, #tpu.memory_space<vmem>>, %arg3: memref<1x128xf32, #tpu.memory_space<vmem>>, %arg4: memref<4x128x128xf32, #tpu.memory_space<vmem>>, %arg5: memref<4x128xf32, #tpu.memory_space<vmem>>, %arg6: memref<1x128xf32, #tpu.memory_space<vmem>>, %arg7: memref<1x1xf32, #tpu.memory_space<vmem>>, %arg8: memref<16x1xf32, #tpu.memory_space<vmem>>) attributes {dimension_semantics = [#tpu.dimension_semantics<parallel>], iteration_bounds = array<i64: 1>, scalar_prefetch = 0 : i64, scratch_operands = 0 : i64, tpu.core_type = #tpu.core_type<tc>, window_params = [{transform_indices = @transform_0, window_bounds = array<i64: 16, 2>}, {pipeline_mode = #tpu.pipeline_mode<synchronous>, transform_indices = @transform_1, window_bounds = array<i64: 2, 128>}, {pipeline_mode = #tpu.pipeline_mode<synchronous>, transform_indices = @transform_2, window_bounds = array<i64: 1, 128>}, {pipeline_mode = #tpu.pipeline_mode<synchronous>, transform_indices = @transform_3, window_bounds = array<i64: 4, 128, 128>}, {pipeline_mode = #tpu.pipeline_mode<synchronous>, transform_indices = @transform_4, window_bounds = array<i64: 4, 128>}, {pipeline_mode = #tpu.pipeline_mode<synchronous>, transform_indices = @transform_5, window_bounds = array<i64: 1, 128>}, {pipeline_mode = #tpu.pipeline_mode<synchronous>, transform_indices = @transform_6, window_bounds = array<i64: 1, 1>}, {transform_indices = @transform_7, window_bounds = array<i64: 16, 1>}]} {
    %c0 = arith.constant 0 : index
    %c0_0 = arith.constant 0 : index
    %0 = vector.load %arg1[%c0, %c0_0] : memref<16x2xf32, #tpu.memory_space<vmem>>, vector<16x2xf32>
    %1 = vector.extract_strided_slice %0 {offsets = [0, 0], sizes = [16, 1], strides = [1, 1]} : vector<16x2xf32> to vector<16x1xf32>
    %c0_1 = arith.constant 0 : index
    %c0_2 = arith.constant 0 : index
    %2 = vector.load %arg2[%c0_1, %c0_2] : memref<2x128xf32, #tpu.memory_space<vmem>>, vector<1x128xf32>
    %3 = vector.broadcast %1 : vector<16x1xf32> to vector<16x128xf32>
    %4 = vector.broadcast %2 : vector<1x128xf32> to vector<16x128xf32>
    %5 = arith.mulf %3, %4 : vector<16x128xf32>
    %6 = vector.extract_strided_slice %0 {offsets = [0, 1], sizes = [16, 1], strides = [1, 1]} : vector<16x2xf32> to vector<16x1xf32>
    %c1 = arith.constant 1 : index
    %c0_3 = arith.constant 0 : index
    %7 = vector.load %arg2[%c1, %c0_3] : memref<2x128xf32, #tpu.memory_space<vmem>>, vector<1x128xf32>
    %8 = vector.broadcast %6 : vector<16x1xf32> to vector<16x128xf32>
    %9 = vector.broadcast %7 : vector<1x128xf32> to vector<16x128xf32>
    %10 = arith.mulf %8, %9 : vector<16x128xf32>
    %11 = arith.addf %5, %10 : vector<16x128xf32>
    %c0_4 = arith.constant 0 : index
    %c0_5 = arith.constant 0 : index
    %12 = vector.load %arg3[%c0_4, %c0_5] : memref<1x128xf32, #tpu.memory_space<vmem>>, vector<1x128xf32>
    %13 = vector.broadcast %12 : vector<1x128xf32> to vector<16x128xf32>
    %14 = arith.addf %11, %13 : vector<16x128xf32>
    %15 = math.sin %14 : vector<16x128xf32>
    %c0_6 = arith.constant 0 : index
    %c0_7 = arith.constant 0 : index
    %c0_8 = arith.constant 0 : index
    %16 = vector.load %arg4[%c0_6, %c0_7, %c0_8] : memref<4x128x128xf32, #tpu.memory_space<vmem>>, vector<1x128x128xf32>
    %17 = vector.shape_cast %16 : vector<1x128x128xf32> to vector<128x128xf32>
    %cst = arith.constant dense<0.000000e+00> : vector<16x128xf32>
    %18 = tpu.matmul %15, %17, %cst {dimension_numbers = #tpu.dot_dimension_numbers<[1], [0], [0], [1], [0, 0, 1, 1], [], []>} : vector<16x128xf32>, vector<128x128xf32>, vector<16x128xf32> -> vector<16x128xf32>
    %c0_9 = arith.constant 0 : index
    %c0_10 = arith.constant 0 : index
    %19 = vector.load %arg5[%c0_9, %c0_10] : memref<4x128xf32, #tpu.memory_space<vmem>>, vector<1x128xf32>
    %20 = vector.broadcast %19 : vector<1x128xf32> to vector<16x128xf32>
    %21 = arith.addf %18, %20 : vector<16x128xf32>
    %22 = math.sin %21 : vector<16x128xf32>
    %c1_11 = arith.constant 1 : index
    %c0_12 = arith.constant 0 : index
    %c0_13 = arith.constant 0 : index
    %23 = vector.load %arg4[%c1_11, %c0_12, %c0_13] : memref<4x128x128xf32, #tpu.memory_space<vmem>>, vector<1x128x128xf32>
    %24 = vector.shape_cast %23 : vector<1x128x128xf32> to vector<128x128xf32>
    %cst_14 = arith.constant dense<0.000000e+00> : vector<16x128xf32>
    %25 = tpu.matmul %22, %24, %cst_14 {dimension_numbers = #tpu.dot_dimension_numbers<[1], [0], [0], [1], [0, 0, 1, 1], [], []>} : vector<16x128xf32>, vector<128x128xf32>, vector<16x128xf32> -> vector<16x128xf32>
    %c1_15 = arith.constant 1 : index
    %c0_16 = arith.constant 0 : index
    %26 = vector.load %arg5[%c1_15, %c0_16] : memref<4x128xf32, #tpu.memory_space<vmem>>, vector<1x128xf32>
    %27 = vector.broadcast %26 : vector<1x128xf32> to vector<16x128xf32>
    %28 = arith.addf %25, %27 : vector<16x128xf32>
    %29 = math.sin %28 : vector<16x128xf32>
    %c2 = arith.constant 2 : index
    %c0_17 = arith.constant 0 : index
    %c0_18 = arith.constant 0 : index
    %30 = vector.load %arg4[%c2, %c0_17, %c0_18] : memref<4x128x128xf32, #tpu.memory_space<vmem>>, vector<1x128x128xf32>
    %31 = vector.shape_cast %30 : vector<1x128x128xf32> to vector<128x128xf32>
    %cst_19 = arith.constant dense<0.000000e+00> : vector<16x128xf32>
    %32 = tpu.matmul %29, %31, %cst_19 {dimension_numbers = #tpu.dot_dimension_numbers<[1], [0], [0], [1], [0, 0, 1, 1], [], []>} : vector<16x128xf32>, vector<128x128xf32>, vector<16x128xf32> -> vector<16x128xf32>
    %c2_20 = arith.constant 2 : index
    %c0_21 = arith.constant 0 : index
    %33 = vector.load %arg5[%c2_20, %c0_21] : memref<4x128xf32, #tpu.memory_space<vmem>>, vector<1x128xf32>
    %34 = vector.broadcast %33 : vector<1x128xf32> to vector<16x128xf32>
    %35 = arith.addf %32, %34 : vector<16x128xf32>
    %36 = math.sin %35 : vector<16x128xf32>
    %c3 = arith.constant 3 : index
    %c0_22 = arith.constant 0 : index
    %c0_23 = arith.constant 0 : index
    %37 = vector.load %arg4[%c3, %c0_22, %c0_23] : memref<4x128x128xf32, #tpu.memory_space<vmem>>, vector<1x128x128xf32>
    %38 = vector.shape_cast %37 : vector<1x128x128xf32> to vector<128x128xf32>
    %cst_24 = arith.constant dense<0.000000e+00> : vector<16x128xf32>
    %39 = tpu.matmul %36, %38, %cst_24 {dimension_numbers = #tpu.dot_dimension_numbers<[1], [0], [0], [1], [0, 0, 1, 1], [], []>} : vector<16x128xf32>, vector<128x128xf32>, vector<16x128xf32> -> vector<16x128xf32>
    %c3_25 = arith.constant 3 : index
    %c0_26 = arith.constant 0 : index
    %40 = vector.load %arg5[%c3_25, %c0_26] : memref<4x128xf32, #tpu.memory_space<vmem>>, vector<1x128xf32>
    %41 = vector.broadcast %40 : vector<1x128xf32> to vector<16x128xf32>
    %42 = arith.addf %39, %41 : vector<16x128xf32>
    %43 = math.sin %42 : vector<16x128xf32>
    %c0_27 = arith.constant 0 : index
    %c0_28 = arith.constant 0 : index
    %44 = vector.load %arg6[%c0_27, %c0_28] : memref<1x128xf32, #tpu.memory_space<vmem>>, vector<1x128xf32>
    %45 = vector.broadcast %44 : vector<1x128xf32> to vector<16x128xf32>
    %46 = arith.mulf %43, %45 : vector<16x128xf32>
    %cst_29 = arith.constant dense<0.000000e+00> : vector<16xf32>
    %47 = vector.multi_reduction <add>, %46, %cst_29 [1] : vector<16x128xf32> to vector<16xf32>
    %48 = vector.shape_cast %47 : vector<16xf32> to vector<16x1xf32>
    %c0_30 = arith.constant 0 : index
    %c0_31 = arith.constant 0 : index
    %49 = vector.load %arg7[%c0_30, %c0_31] : memref<1x1xf32, #tpu.memory_space<vmem>>, vector<1x1xf32>
    %50 = vector.broadcast %49 : vector<1x1xf32> to vector<16x1xf32>
    %51 = arith.addf %48, %50 : vector<16x1xf32>
    %c0_32 = arith.constant 0 : index
    %c0_33 = arith.constant 0 : index
    %52 = vector.load %arg8[%c0_32, %c0_33] : memref<16x1xf32, #tpu.memory_space<vmem>>, vector<16x1xf32>
    tpu.vector_store %arg8[%c0_32, %c0_33], %51 {strides = array<i32>} : memref<16x1xf32, #tpu.memory_space<vmem>>, vector<16x1xf32>,
    return
  }
  func.func @transform_0(%arg0: i32) -> (i32, i32) {
    %c0_i32 = arith.constant 0 : i32
    %c0_i32_0 = arith.constant 0 : i32
    return %arg0, %c0_i32 : i32, i32
  }
  func.func @transform_1(%arg0: i32) -> (i32, i32) {
    %c0_i32 = arith.constant 0 : i32
    %c0_i32_0 = arith.constant 0 : i32
    %c0_i32_1 = arith.constant 0 : i32
    return %c0_i32, %c0_i32_0 : i32, i32
  }
  func.func @transform_2(%arg0: i32) -> (i32, i32) {
    %c0_i32 = arith.constant 0 : i32
    %c0_i32_0 = arith.constant 0 : i32
    %c0_i32_1 = arith.constant 0 : i32
    return %c0_i32, %c0_i32_0 : i32, i32
  }
  func.func @transform_3(%arg0: i32) -> (i32, i32, i32) {
    %c0_i32 = arith.constant 0 : i32
    %c0_i32_0 = arith.constant 0 : i32
    %c0_i32_1 = arith.constant 0 : i32
    %c0_i32_2 = arith.constant 0 : i32
    return %c0_i32, %c0_i32_0, %c0_i32_1 : i32, i32, i32
  }
  func.func @transform_4(%arg0: i32) -> (i32, i32) {
    %c0_i32 = arith.constant 0 : i32
    %c0_i32_0 = arith.constant 0 : i32
    %c0_i32_1 = arith.constant 0 : i32
    return %c0_i32, %c0_i32_0 : i32, i32
  }
  func.func @transform_5(%arg0: i32) -> (i32, i32) {
    %c0_i32 = arith.constant 0 : i32
    %c0_i32_0 = arith.constant 0 : i32
    %c0_i32_1 = arith.constant 0 : i32
    return %c0_i32, %c0_i32_0 : i32, i32
  }
  func.func @transform_6(%arg0: i32) -> (i32, i32) {
    %c0_i32 = arith.constant 0 : i32
    %c0_i32_0 = arith.constant 0 : i32
    %c0_i32_1 = arith.constant 0 : i32
    return %c0_i32, %c0_i32_0 : i32, i32
  }
  func.func @transform_7(%arg0: i32) -> (i32, i32) {
    %c0_i32 = arith.constant 0 : i32
    %c0_i32_0 = arith.constant 0 : i32
    return %arg0, %c0_i32 : i32, i32
  }
}

</mosaic_0001>

<bundles_post_ra>
// kernel: _fnn_forward.1
= control target key start
LH: loop header
LB: loop body
LE: loop exit
PB: predicated region body
PF: predicated region fallthrough
CT: control target
= control target key end

     0   :  { %v2058_v0 = vmov 0   ;;  %v2059_v3 = vmov 1   ;;  %s2767_s0 = inlined_call_operand.vmem [shape: f32[16,2], index: 0, kind: input, shape index: {}]   ;;  %s2768_s3 = inlined_call_operand.vmem [shape: f32[4,128,128], index: 3, kind: input, shape index: {}]   ;;  %s2769_s1 = inlined_call_operand.vmem [shape: f32[2,128], index: 1, kind: input, shape index: {}]   ;;  %s2770_s2 = inlined_call_operand.vmem [shape: f32[1,128], index: 2, kind: input, shape index: {}]   ;;  %s2771_s4 = inlined_call_operand.vmem [shape: f32[4,128], index: 4, kind: input, shape index: {}]   ;;  %s2772_s6 = inlined_call_operand.<no memory space> [shape: f32[1,1], index: 6, kind: input, shape index: {}]   ;;  %s2773_s5 = inlined_call_operand.vmem [shape: f32[1,128], index: 5, kind: input, shape index: {}]   ;;  %s2774_s7 = inlined_call_operand.vmem [shape: f32[16,1], index: 7, kind: output, shape index: {}]  }
   0x1   :  { %2016 = vset.pattern.permute.xlu1 %v2058_v0  ;;  %2014 = vset.pattern.permute.xlu0 %v2058_v0  ;;  %v29_v1 = vld [vmem:[%s2767_s0 + $0x8] sm:$0xff]  ;;  %v28_v2 = vld [vmem:[%s2767_s0] sm:$0xff]  ;;  %v283_v6 = vld [vmem:[%s2768_s3 + $0x10] sm:$0xff] }
   0x2   :  { %38 = vperm.xlu1 %2016, %v29_v1   ;;  %33 = vperm.xlu0 %2014, %v28_v2   ;;  %v281_v4 = vld [vmem:[%s2768_s3] sm:$0xff]  ;;  %v282_v5 = vld [vmem:[%s2768_s3 + $0x8] sm:$0xff]  ;;  %v284_v8 = vld [vmem:[%s2768_s3 + $0x18] sm:$0xff] }
   0x3   :  { %v1838_v7 = vpack.c.bf16 %v282_v5, %v281_v4  ;;  %v1842_v9 = vpack.c.bf16 %v284_v8, %v283_v6  ;;  %v285_v10 = vld [vmem:[%s2768_s3 + $0x20] sm:$0xff]  ;;  %v286_v11 = vld [vmem:[%s2768_s3 + $0x28] sm:$0xff]  ;;  %v287_v13 = vld [vmem:[%s2768_s3 + $0x30] sm:$0xff]  ;;  %v2061_v5 = vmov 2475754826  }
   0x4   :  { %v1846_v12 = vpack.c.bf16 %v286_v11, %v285_v10  ;;  %v288_v14 = vld [vmem:[%s2768_s3 + $0x38] sm:$0xff]  ;;  %v289_v16 = vld [vmem:[%s2768_s3 + $0x40] sm:$0xff]  ;;  %v290_v17 = vld [vmem:[%s2768_s3 + $0x48] sm:$0xff]  ;;  %v2063_v11 = vmov 2102212464  }
   0x5   :  { %1839 = vmatprep.subr.bf16.mxu0 %v1838_v7  ;;  %v1850_v15 = vpack.c.bf16 %v288_v14, %v287_v13  ;;  %v1854_v18 = vpack.c.bf16 %v290_v17, %v289_v16  ;;  %v291_v19 = vld [vmem:[%s2768_s3 + $0x50] sm:$0xff]  ;;  %v292_v20 = vld [vmem:[%s2768_s3 + $0x58] sm:$0xff]  ;;  %v293_v22 = vld [vmem:[%s2768_s3 + $0x60] sm:$0xff]  ;;  %v2064_v14 = vmov 920167782  }
   0x6   :  { %2017 = vset.pattern.permute.xlu1 %v2059_v3  ;;  %2015 = vset.pattern.permute.xlu0 %v2059_v3  ;;  %v1858_v21 = vpack.c.bf16 %v292_v20, %v291_v19  ;;  %v294_v23 = vld [vmem:[%s2768_s3 + $0x68] sm:$0xff]  ;;  %v295_v25 = vld [vmem:[%s2768_s3 + $0x70] sm:$0xff]  ;;  %v296_v26 = vld [vmem:[%s2768_s3 + $0x78] sm:$0xff]  ;;  %v2060_v3 = vmov 683565275  }
   0x7   :  { %53 = vperm.xlu1 %2017, %v29_v1   ;;  %49 = vperm.xlu0 %2015, %v28_v2   ;;  %v1862_v24 = vpack.c.bf16 %v294_v23, %v293_v22  ;;  %v1866_v27 = vpack.c.bf16 %v296_v26, %v295_v25  ;;  %v1529_v30 = vld [vmem:[%s2769_s1] ss:$0 sm:$0xff]  ;;  %v1530_v31 = vld [vmem:[%s2769_s1 + $0x1] ss:$0 sm:$0xff]  ;;  %v2065_v17 = vmov 1326507024  }
   0x8   :  { %1841 = vmatpush3.bf16.msra.mxu0 %v1838_v7  ;;  %v1531_v38 = vld [vmem:[%s2770_s2] ss:$0 sm:$0xff]  ;;  %v2062_v7 = vmov 2131351028  }
   0x9   :  { %1843 = vmatprep.subr.bf16.mxu0 %v1842_v9 }
   0xc   :  { %1845 = vmatpush3.bf16.msra.mxu0 %v1842_v9 }
   0xd   :  { %1847 = vmatprep.subr.bf16.mxu0 %v1846_v12 }
  0x10   :  { %1849 = vmatpush3.bf16.msra.mxu0 %v1846_v12 }
  0x11   :  { %1851 = vmatprep.subr.bf16.mxu0 %v1850_v15 }
  0x14   :  { %1853 = vmatpush3.bf16.msra.mxu0 %v1850_v15 }
  0x15   :  { %1855 = vmatprep.subr.bf16.mxu0 %v1854_v18 }
  0x18   :  { %1857 = vmatpush3.bf16.msra.mxu0 %v1854_v18 }
  0x19   :  { %1859 = vmatprep.subr.bf16.mxu0 %v1858_v21 }
  0x1c   :  { %1861 = vmatpush3.bf16.msra.mxu0 %v1858_v21 }
  0x1d   :  { %1863 = vmatprep.subr.bf16.mxu0 %v1862_v24 }
  0x20   :  { %1865 = vmatpush3.bf16.msra.mxu0 %v1862_v24 }
  0x21   :  { %1867 = vmatprep.subr.bf16.mxu0 %v1866_v27 }
  0x24   :  { %1869 = vmatpush3.bf16.msra.mxu0 %v1866_v27 }
  0x81   :  { %v34_v28 = vpop.permute.xlu0 %33  ;;  %v39_v29 = vpop.permute.xlu1 %38 }
  0x82   :  { %v45_v34 = vmul.f32 %v1529_v30, %v34_v28  ;;  %v46_v35 = vmul.f32 %v1529_v30, %v39_v29 }
  0x86   :  { %v54_v32 = vpop.permute.xlu1 %53  ;;  %v50_v33 = vpop.permute.xlu0 %49 }
  0x87   :  { %v61_v36 = vmul.f32 %v1530_v31, %v54_v32  ;;  %v60_v37 = vmul.f32 %v1530_v31, %v50_v33 }
  0x89   :  { %v63_v39 = vadd.f32 %v61_v36, %v46_v35  ;;  %v62_v40 = vadd.f32 %v60_v37, %v45_v34 }
  0x8b   :  { %v2169_v41 = vadd.f32 %v1531_v38, %v63_v39  ;;  %v2171_v42 = vadd.f32 %v1531_v38, %v62_v40 }
  0x8d   :  { %v180_v43 = vand.u32 2139095040, %v2169_v41  ;;  %v76_v44 = vand.u32 2139095040, %v2171_v42  ;;  %v73_v45 = vand.u32 2147483647, %v2171_v42  ;;  %v177_v46 = vand.u32 2147483647, %v2169_v41 }
  0x8e   :  { %vm75_vm14 = vcmp.lt.s32.totalorder %v2171_v42, 0 }
  0x8f   :  { %v181_v47 = vshrl.u32 %v180_v43, 23  ;;  %v77_v48 = vshrl.u32 %v76_v44, 23  ;;  %v80_v51 = vand.u32 8388607, %v73_v45  ;;  %v184_v52 = vand.u32 8388607, %v177_v46 }
  0x90   :  { %vm74_vm15 = vcmp.le.f32.partialorder %v73_v45, 0.7853982 }
  0x91   :  { %v1536_v49 = vadd.s32 4294967169, %v181_v47  ;;  %v1532_v50 = vadd.s32 4294967169, %v77_v48  ;;  %v81_v55 = vor.u32 8388608, %v80_v51  ;;  %v185_v56 = vor.u32 8388608, %v184_v52 }
  0x93   :  { %v187_v53 = vadd.s32 1, %v1536_v49  ;;  %v83_v54 = vadd.s32 1, %v1532_v50  ;;  %v2185_v0 = vshll.u32 %v81_v55, 8  ;;  %v2187_v1 = vshll.u32 %v185_v56, 8 }
  0x95   :  { %vm188_vm0 = vcmp.gt.s32.totalorder %v187_v53, 0  ;;  %vm84_vm1 = vcmp.gt.s32.totalorder %v83_v54, 0 }
  0x96   :  { %v189_v57 = vsel %vm188_vm0, %v187_v53, 0  ;;  %v85_v58 = vsel %vm84_vm1, %v83_v54, 0  ;;  %vm179_vm0 = vcmp.lt.s32.totalorder %v2169_v41, 0  ;;  %vm178_vm1 = vcmp.le.f32.partialorder %v177_v46, 0.7853982 }
  0x97   :  { %v2181_v59 = vand.u32 31, %v189_v57  ;;  %v87_v60 = vand.u32 31, %v85_v58  ;;  %v86_v61 = vshrl.u32 %v85_v58, 5  ;;  %v2183_v62 = vshrl.u32 %v189_v57, 5 }
  0x99   :  { %v88_v63 = vsub.s32 32, %v87_v60  ;;  %v192_v2 = vsub.s32 32, %v2181_v59  ;;  %v90_v4 = vshll.u32 %v2060_v3, %v87_v60  ;;  %v93_v6 = vshll.u32 %v2061_v5, %v87_v60 }
  0x9a   :  { %v96_v8 = vshll.u32 %v2062_v7, %v87_v60  ;;  %v99_v13 = vshll.u32 %v2063_v11, %v87_v60  ;;  %v102_v16 = vshll.u32 %v2064_v14, %v87_v60  ;;  %vm105_vm2 = vcmp.lt.s32.totalorder %v86_v61, 1 }
  0x9b   :  { %v91_v9 = vshrl.u32 %v2061_v5, %v88_v63  ;;  %v94_v10 = vshrl.u32 %v2062_v7, %v88_v63  ;;  %v97_v12 = vshrl.u32 %v2063_v11, %v88_v63  ;;  %v100_v15 = vshrl.u32 %v2064_v14, %v88_v63 }
  0x9c   :  { %v103_v18 = vshrl.u32 %v2065_v17, %v88_v63  ;;  %v89_v19 = vshrl.u32 %v2060_v3, %v88_v63  ;;  %vm107_vm3 = vcmp.lt.s32.totalorder %v86_v61, 3  ;;  %vm108_vm4 = vcmp.lt.s32.totalorder %v86_v61, 4 }
  0x9d   :  { %v92_v20 = vor.u32 %v91_v9, %v90_v4  ;;  %v95_v21 = vor.u32 %v94_v10, %v93_v6  ;;  %v98_v22 = vor.u32 %v97_v12, %v96_v8  ;;  %v101_v23 = vor.u32 %v100_v15, %v99_v13 }
  0x9e   :  { %v104_v24 = vor.u32 %v103_v18, %v102_v16  ;;  %v195_v32 = vshrl.u32 %v2061_v5, %v192_v2  ;;  %vm106_vm5 = vcmp.lt.s32.totalorder %v86_v61, 2  ;;  %v194_v35 = vshll.u32 %v2060_v3, %v2181_v59 }
  0x9f   :  { %v109_v25 = vsel %vm105_vm2, %v89_v19, %v92_v20  ;;  %v110_v26 = vsel %vm108_vm4, %v98_v22, 2102212464  ;;  %v113_v27 = vsel %vm105_vm2, %v92_v20, %v95_v21  ;;  %v117_v28 = vsel %vm105_vm2, %v95_v21, %v98_v22 }
  0xa0   :  { %v111_v29 = vsel %vm107_vm3, %v95_v21, %v110_v26  ;;  %v114_v30 = vsel %vm108_vm4, %v101_v23, 920167782  ;;  %v118_v31 = vsel %vm108_vm4, %v104_v24, 1326507024  ;;  %v197_v39 = vshll.u32 %v2061_v5, %v2181_v59 }
  0xa1   :  { %v115_v33 = vsel %vm107_vm3, %v98_v22, %v114_v30  ;;  %v119_v34 = vsel %vm107_vm3, %v101_v23, %v118_v31  ;;  %v112_v36 = vsel %vm106_vm5, %v109_v25, %v111_v29  ;;  %v196_v48 = vor.u32 %v195_v32, %v194_v35 }
  0xa2   :  { %v116_v37 = vsel %vm106_vm5, %v113_v27, %v115_v33  ;;  %v120_v38 = vsel %vm106_vm5, %v117_v28, %v119_v34  ;;  %v198_v49 = vshrl.u32 %v2062_v7, %v192_v2  ;;  %v200_v50 = vshll.u32 %v2062_v7, %v2181_v59 }
  0xa3   :  { %v2207_v40 = vmul.u32.u64.low %v2185_v0, %v120_v38  ;;  %v2208_v43 = vmul.u32.u64.high %v2185_v0, %v120_v38, %v2207_v40  ;;  %v2211_v44 = vmul.u32.u64.low %v2185_v0, %v116_v37  ;;  %v2212_v47 = vmul.u32.u64.high %v2185_v0, %v116_v37, %v2211_v44 }
  0xa4   :  { %v201_v51 = vshrl.u32 %v2063_v11, %v192_v2  ;;  %v193_v52 = vshrl.u32 %v2060_v3, %v192_v2  ;;  %v203_v53 = vshll.u32 %v2063_v11, %v2181_v59  ;;  %v204_v54 = vshrl.u32 %v2064_v14, %v192_v2 }
  0xa5   :  { %v207_v55 = vshrl.u32 %v2065_v17, %v192_v2  ;;  %v128_v56 = vmul.u32 %v2185_v0, %v112_v36  ;;  %v199_v57 = vor.u32 %v198_v49, %v197_v39  ;;  %v206_v60 = vshll.u32 %v2064_v14, %v2181_v59 }
  0xa6   :  { %v202_v58 = vor.u32 %v201_v51, %v200_v50  ;;  %vm130_vm6 = vc.u32 %v2208_v43, %v2211_v44  ;;  %v131_v61 = vadd.s32 1, %v2212_v47  ;;  %v205_v63 = vor.u32 %v204_v54, %v203_v53 }
  0xa7   :  { %vm209_vm7 = vcmp.lt.s32.totalorder %v2183_v62, 1  ;;  %v208_v4 = vor.u32 %v207_v55, %v206_v60  ;;  %vm211_vm8 = vcmp.lt.s32.totalorder %v2183_v62, 3  ;;  %vm212_vm9 = vcmp.lt.s32.totalorder %v2183_v62, 4 }
  0xa8   :  { %v217_v2 = vsel %vm209_vm7, %v196_v48, %v199_v57  ;;  %v132_v0 = vsel %vm130_vm6, %v131_v61, %v2212_v47  ;;  %v214_v6 = vsel %vm212_vm9, %v202_v58, 2102212464  ;;  %v218_v8 = vsel %vm212_vm9, %v205_v63, 920167782 }
  0xa9   :  { %v221_v9 = vsel %vm209_vm7, %v199_v57, %v202_v58  ;;  %v133_v10 = vadd.s32 %v132_v0, %v128_v56  ;;  %vm210_vm10 = vcmp.lt.s32.totalorder %v2183_v62, 2  ;;  %v219_v59 = vsel %vm211_vm8, %v202_v58, %v218_v8 }
  0xaa   :  { %v222_v12 = vsel %vm212_vm9, %v208_v4, 1326507024  ;;  %v213_v13 = vsel %vm209_vm7, %v193_v52, %v196_v48  ;;  %v215_v15 = vsel %vm211_vm8, %v199_v57, %v214_v6  ;;  %v220_v16 = vsel %vm210_vm10, %v217_v2, %v219_v59 }
  0xab   :  { %v223_v18 = vsel %vm211_vm8, %v205_v63, %v222_v12  ;;  %v134_v19 = vadd.s32 536870912, %v133_v10  ;;  %v2234_v21 = vmul.u32.u64.low %v2187_v1, %v220_v16  ;;  %v2235_v22 = vmul.u32.u64.high %v2187_v1, %v220_v16, %v2234_v21 }
  0xac   :  { %v224_v20 = vsel %vm210_vm10, %v221_v9, %v223_v18  ;;  %v216_v26 = vsel %vm210_vm10, %v213_v13, %v215_v15  ;;  %v129_v48 = vadd.s32 %v2211_v44, %v2208_v43  ;;  %vm165_vm5 = vweird.f32 %v2171_v42 }
  0xad   :  { %v2238_v23 = vmul.u32.u64.low %v2187_v1, %v224_v20  ;;  %v2239_v24 = vmul.u32.u64.high %v2187_v1, %v224_v20, %v2238_v23  ;;  %v135_v25 = vshrl.u32 %v134_v19, 30  ;;  %v235_v62 = vadd.s32 1, %v2235_v22 }
  0xae   :  { %v232_v28 = vmul.u32 %v2187_v1, %v216_v26  ;;  %vm269_vm9 = vweird.f32 %v2169_v41 }
  0xaf   :  { %v136_v27 = vshll.u32 %v135_v25, 30  ;;  %vm234_vm11 = vc.u32 %v2239_v24, %v2234_v21  ;;  %v233_v4 = vadd.s32 %v2234_v21, %v2239_v24  ;;  %v159_v44 = vsub.s32 4, %v135_v25 }
  0xb0   :  { %v236_v30 = vsel %vm234_vm11, %v235_v62, %v2235_v22 }
  0xb1   :  { %v137_v29 = vsub.s32 %v133_v10, %v136_v27  ;;  %v237_v31 = vadd.s32 %v236_v30, %v232_v28  ;;  %v160_v15 = vsel %vm75_vm14, %v159_v44, %v135_v25 }
  0xb2   :  { %v162_v19 = vsel %vm74_vm15, 0, %v160_v15 }
  0xb3   :  { %v139_v32 = vsub.s32 0, %v137_v29  ;;  %v238_v33 = vadd.s32 536870912, %v237_v31  ;;  %v166_v24 = vadd.s32 3, %v162_v19 }
  0xb5   :  { %v1533_v34 = vmin.u32 %v139_v32, %v137_v29  ;;  %v239_v35 = vshrl.u32 %v238_v33, 30  ;;  %v167_v25 = vand.u32 3, %v166_v24 }
  0xb7   :  { %v141_v36 = vclz %v1533_v34  ;;  %v240_v37 = vshll.u32 %v239_v35, 30  ;;  %v263_v23 = vsub.s32 4, %v239_v35  ;;  %vm172_vm2 = vcmp.eq.s32.totalorder %v167_v25, 2 }
  0xb8   :  { %vm169_vm3 = vcmp.eq.s32.totalorder %v167_v25, 0  ;;  %vm168_vm4 = vcmp.lt.s32.totalorder %v167_v25, 2 }
  0xb9   :  { %v1534_v38 = vadd.s32 4294967294, %v141_v36  ;;  %v241_v39 = vsub.s32 %v237_v31, %v240_v37  ;;  %v264_v27 = vsel %vm179_vm0, %v263_v23, %v239_v35 }
  0xbb   :  { %vm1535_vm12 = vcmp.lt.s32.totalorder %v1534_v38, 0  ;;  %v243_v47 = vsub.s32 0, %v241_v39 }
  0xbc   :  { %v144_v40 = vsel %vm1535_vm12, 0, %v1534_v38 }
  0xbd   :  { %v145_v1 = vsub.s32 32, %v144_v40  ;;  %v149_v49 = vsub.s32 4294967266, %v144_v40  ;;  %v1537_v50 = vmin.u32 %v243_v47, %v241_v39  ;;  %v146_v51 = vshll.u32 %v137_v29, %v144_v40 }
  0xbe   :  { %v266_v29 = vsel %vm178_vm1, 0, %v264_v27 }
  0xbf   :  { %v147_v52 = vshrl.u32 %v129_v48, %v145_v1  ;;  %v150_v53 = vadd.s32 127, %v149_v49  ;;  %v245_v54 = vclz %v1537_v50  ;;  %v270_v34 = vadd.s32 3, %v266_v29 }
  0xc1   :  { %v148_v55 = vor.u32 %v147_v52, %v146_v51  ;;  %v151_v56 = vshll.u32 %v150_v53, 23  ;;  %v1538_v57 = vadd.s32 4294967294, %v245_v54  ;;  %v271_v37 = vand.u32 3, %v270_v34  ;;  %v1550_v51 = vld [vmem:[%s2768_s3 + $0x88] sm:$0xff]  ;;  %v1551_v53 = vld [vmem:[%s2768_s3 + $0x90] sm:$0xff] }
  0xc3   :  { %v152_v58 = vor.u32 4788187, %v151_v56  ;;  %vm1539_vm13 = vcmp.lt.s32.totalorder %v1538_v57, 0  ;;  %v155_v61 = vcvt.s32.f32 %v148_v55  ;;  %vm276_vm6 = vcmp.eq.s32.totalorder %v271_v37, 2  ;;  %v1553_v55 = vld [vmem:[%s2768_s3 + $0xa0] sm:$0xff]  ;;  %v1554_v56 = vld [vmem:[%s2768_s3 + $0xa8] sm:$0xff] }
  0xc4   :  { %v248_v63 = vsel %vm1539_vm13, 0, %v1538_v57  ;;  %vm273_vm7 = vcmp.eq.s32.totalorder %v271_v37, 0  ;;  %vm272_vm8 = vcmp.lt.s32.totalorder %v271_v37, 2  ;;  %v1555_v57 = vld [vmem:[%s2768_s3 + $0xb0] sm:$0xff] }
  0xc5   :  { %v153_v60 = vand.u32 2147483647, %v152_v58  ;;  %v249_v2 = vsub.s32 32, %v248_v63  ;;  %v253_v0 = vsub.s32 4294967266, %v248_v63  ;;  %v250_v6 = vshll.u32 %v241_v39, %v248_v63  ;;  %v1557_v63 = vld [vmem:[%s2768_s3 + $0xc0] sm:$0xff] }
  0xc6   :  { %v1878_v58 = vpack.c.bf16 %v1554_v56, %v1553_v55 }
  0xc7   :  { %v156_v43 = vmul.f32 %v155_v61, %v153_v60  ;;  %v251_v8 = vshrl.u32 %v233_v4, %v249_v2  ;;  %v254_v9 = vadd.s32 127, %v253_v0  ;;  %v1556_v60 = vld [vmem:[%s2768_s3 + $0xb8] sm:$0xff]  ;;  %v1558_v4 = vld [vmem:[%s2768_s3 + $0xc8] sm:$0xff]  ;;  %v1559_v0 = vld [vmem:[%s2768_s3 + $0xd0] sm:$0xff] }
  0xc8   :  { %v1882_v61 = vpack.c.bf16 %v1556_v60, %v1555_v57  ;;  %v1886_v2 = vpack.c.bf16 %v1558_v4, %v1557_v63 }
  0xc9   :  { %v157_v10 = vxor.u32 2147483648, %v156_v43  ;;  %v252_v59 = vor.u32 %v251_v8, %v250_v6  ;;  %v255_v12 = vshll.u32 %v254_v9, 23  ;;  %v1561_v6 = vld [vmem:[%s2768_s3 + $0xe0] sm:$0xff]  ;;  %v1562_v8 = vld [vmem:[%s2768_s3 + $0xe8] sm:$0xff] }
  0xca   :  { %v1894_v9 = vpack.c.bf16 %v1562_v8, %v1561_v6 }
  0xcb   :  { %v158_v13 = vsel %vm75_vm14, %v157_v10, %v156_v43  ;;  %v256_v18 = vor.u32 4788187, %v255_v12  ;;  %v259_v21 = vcvt.s32.f32 %v252_v59  ;;  %v1560_v43 = vld [vmem:[%s2768_s3 + $0xd8] sm:$0xff]  ;;  %v1563_v10 = vld [vmem:[%s2768_s3 + $0xf0] sm:$0xff] }
  0xcc   :  { %v161_v16 = vsel %vm74_vm15, %v2171_v42, %v158_v13  ;;  %v1549_v42 = vld [vmem:[%s2768_s3 + $0x80] sm:$0xff]  ;;  %v1890_v44 = vpack.c.bf16 %v1560_v43, %v1559_v0  ;;  %v1564_v59 = vld [vmem:[%s2768_s3 + $0xf8] sm:$0xff] }
  0xcd   :  { %2018 = vcosq.f32 %v161_v16  ;;  %v257_v20 = vand.u32 2147483647, %v256_v18  ;;  %v1870_v52 = vpack.c.bf16 %v1550_v51, %v1549_v42  ;;  %v1898_v12 = vpack.c.bf16 %v1564_v59, %v1563_v10  ;;  %v1540_v13 = vld [vmem:[%s2771_s4] ss:$0 sm:$0xff] }
  0xce   :  { %2020 = vsinq.f32 %v161_v16 }
  0xcf   :  { %v260_v22 = vmul.f32 %v259_v21, %v257_v20  ;;  %1871 = vmatprep.subr.bf16.mxu1 %v1870_v52 }
  0xd0   :  { %1873 = vmatpush3.bf16.msra.mxu1 %v1870_v52 }
  0xd1   :  { %v261_v26 = vxor.u32 2147483648, %v260_v22 }
  0xd3   :  { %v262_v45 = vsel %vm179_vm0, %v261_v26, %v260_v22 }
  0xd4   :  { %v265_v62 = vsel %vm178_vm1, %v2169_v41, %v262_v45  ;;  %v1552_v41 = vld [vmem:[%s2768_s3 + $0x98] sm:$0xff] }
  0xd5   :  { %2022 = vcosq.f32 %v265_v62  ;;  %v1874_v54 = vpack.c.bf16 %v1552_v41, %v1551_v53 }
  0xd6   :  { %2024 = vsinq.f32 %v265_v62 }
  0xd7   :  { %v2019_v28 = vpop.eup %2018  ;;  %1875 = vmatprep.subr.bf16.mxu1 %v1874_v54 }
  0xd8   :  { %v2021_v30 = vpop.eup %2020  ;;  %v173_v31 = vxor.u32 2147483648, %v2019_v28  ;;  %1877 = vmatpush3.bf16.msra.mxu1 %v1874_v54 }
  0xd9   :  { %v170_v32 = vxor.u32 2147483648, %v2021_v30  ;;  %1879 = vmatprep.subr.bf16.mxu1 %v1878_v58 }
  0xda   :  { %v174_v33 = vsel %vm172_vm2, %v173_v31, %v2021_v30 }
  0xdb   :  { %v171_v36 = vsel %vm169_vm3, %v2019_v28, %v170_v32 }
  0xdc   :  { %v175_v46 = vsel %vm168_vm4, %v171_v36, %v174_v33  ;;  %1881 = vmatpush3.bf16.msra.mxu1 %v1878_v58 }
  0xdd   :  { %v176_v35 = vsel %vm165_vm5, nan, %v175_v46  ;;  %1883 = vmatprep.subr.bf16.mxu1 %v1882_v61 }
  0xde   :  { %1730 = vmatprep.mubr.f32.mxu0 %v176_v35 }
  0xdf   :  { %v2023_v38 = vpop.eup %2022 }
  0xe0   :  { %v2025_v39 = vpop.eup %2024  ;;  %v277_v40 = vxor.u32 2147483648, %v2023_v38  ;;  %1885 = vmatpush3.bf16.msra.mxu1 %v1882_v61 }
  0xe1   :  { %v274_v47 = vxor.u32 2147483648, %v2025_v39  ;;  %1887 = vmatprep.subr.bf16.mxu1 %v1886_v2 }
  0xe2   :  { %v278_v48 = vsel %vm276_vm6, %v277_v40, %v2025_v39 }
  0xe3   :  { %v275_v1 = vsel %vm273_vm7, %v2023_v38, %v274_v47 }
  0xe4   :  { %v279_v49 = vsel %vm272_vm8, %v275_v1, %v278_v48  ;;  %1889 = vmatpush3.bf16.msra.mxu1 %v1886_v2 }
  0xe5   :  { %v280_v50 = vsel %vm269_vm9, nan, %v279_v49  ;;  %1891 = vmatprep.subr.bf16.mxu1 %v1890_v44 }
  0xe6   :  { %1731 = vmatmul.mubr.f32.vlgmr.msra.gmra.mrb[0].mxu0 %v280_v50 }
  0xe8   :  { %1893 = vmatpush3.bf16.msra.mxu1 %v1890_v44 }
  0xe9   :  { %1895 = vmatprep.subr.bf16.mxu1 %v1894_v9 }
  0xec   :  { %1897 = vmatpush3.bf16.msra.mxu1 %v1894_v9 }
  0xed   :  { %1899 = vmatprep.subr.bf16.mxu1 %v1898_v12 }
  0xf0   :  { %1901 = vmatpush3.bf16.msra.mxu1 %v1898_v12 }
 0x1b9   :  { %v1732_v15 = vpop.f32.mrb[0].mxu0 }
 0x1ba   :  { %v2308_v16 = vadd.f32 %v1732_v15, %v1540_v13  ;;  %v368_v18 = vpop.f32.mrb[1].mxu0 }
 0x1bb   :  { %v2310_v19 = vadd.f32 %v1540_v13, %v368_v18 }
 0x1bc   :  { %v481_v20 = vand.u32 2147483647, %v2308_v16  ;;  %v484_v21 = vand.u32 2139095040, %v2308_v16  ;;  %vm483_vm8 = vcmp.lt.s32.totalorder %v2308_v16, 0 }
 0x1bd   :  { %v380_v22 = vand.u32 2139095040, %v2310_v19  ;;  %v377_v29 = vand.u32 2147483647, %v2310_v19 }
 0x1be   :  { %v485_v23 = vshrl.u32 %v484_v21, 23  ;;  %v488_v24 = vand.u32 8388607, %v481_v20  ;;  %vm482_vm9 = vcmp.le.f32.partialorder %v481_v20, 0.7853982 }
 0x1bf   :  { %v381_v26 = vshrl.u32 %v380_v22, 23  ;;  %v2324_v46 = vand.u32 8388607, %v377_v29 }
 0x1c0   :  { %v1545_v45 = vadd.s32 4294967169, %v485_v23  ;;  %v489_v62 = vor.u32 8388608, %v488_v24 }
 0x1c1   :  { %v1541_v27 = vadd.s32 4294967169, %v381_v26 }
 0x1c2   :  { %v491_v25 = vadd.s32 1, %v1545_v45  ;;  %v2318_v34 = vshll.u32 %v489_v62, 8  ;;  %v385_v45 = vor.u32 8388608, %v2324_v46 }
 0x1c3   :  { %v387_v28 = vadd.s32 1, %v1541_v27 }
 0x1c4   :  { %vm492_vm10 = vcmp.gt.s32.totalorder %v491_v25, 0 }
 0x1c5   :  { %v493_v30 = vsel %vm492_vm10, %v491_v25, 0  ;;  %vm388_vm11 = vcmp.gt.s32.totalorder %v387_v28, 0  ;;  %vm379_vm10 = vcmp.lt.s32.totalorder %v2310_v19, 0 }
 0x1c6   :  { %v494_v31 = vshrl.u32 %v493_v30, 5  ;;  %v495_v32 = vand.u32 31, %v493_v30  ;;  %v389_v33 = vsel %vm388_vm11, %v387_v28, 0  ;;  %vm378_vm11 = vcmp.le.f32.partialorder %v377_v29, 0.7853982 }
 0x1c7   :  { %v2320_v36 = vshrl.u32 %v389_v33, 5  ;;  %v391_v39 = vand.u32 31, %v389_v33 }
 0x1c8   :  { %v496_v35 = vsub.s32 32, %v495_v32  ;;  %v498_v37 = vshll.u32 %v2060_v3, %v495_v32  ;;  %v501_v38 = vshll.u32 %v2061_v5, %v495_v32  ;;  %v504_v40 = vshll.u32 %v2062_v7, %v495_v32 }
 0x1c9   :  { %v507_v47 = vshll.u32 %v2063_v11, %v495_v32  ;;  %v510_v48 = vshll.u32 %v2064_v14, %v495_v32  ;;  %vm513_vm12 = vcmp.lt.s32.totalorder %v494_v31, 1  ;;  %vm514_vm13 = vcmp.lt.s32.totalorder %v494_v31, 2 }
 0x1ca   :  { %v499_v1 = vshrl.u32 %v2061_v5, %v496_v35  ;;  %v502_v49 = vshrl.u32 %v2062_v7, %v496_v35  ;;  %v505_v50 = vshrl.u32 %v2063_v11, %v496_v35  ;;  %v497_v42 = vshrl.u32 %v2060_v3, %v496_v35 }
 0x1cb   :  { %v508_v51 = vshrl.u32 %v2064_v14, %v496_v35  ;;  %v511_v52 = vshrl.u32 %v2065_v17, %v496_v35  ;;  %vm515_vm14 = vcmp.lt.s32.totalorder %v494_v31, 3  ;;  %v392_v55 = vsub.s32 32, %v391_v39 }
 0x1cc   :  { %v500_v53 = vor.u32 %v499_v1, %v498_v37  ;;  %v503_v41 = vor.u32 %v502_v49, %v501_v38  ;;  %v506_v54 = vor.u32 %v505_v50, %v504_v40  ;;  %vm516_vm15 = vcmp.lt.s32.totalorder %v494_v31, 4 }
 0x1cd   :  { %v509_v56 = vor.u32 %v508_v51, %v507_v47  ;;  %v512_v57 = vor.u32 %v511_v52, %v510_v48  ;;  %v403_v58 = vshll.u32 %v2063_v11, %v391_v39  ;;  %v404_v44 = vshrl.u32 %v2064_v14, %v392_v55 }
 0x1ce   :  { %v517_v60 = vsel %vm513_vm12, %v497_v42, %v500_v53  ;;  %v518_v61 = vsel %vm516_vm15, %v506_v54, 2102212464  ;;  %v521_v63 = vsel %vm513_vm12, %v500_v53, %v503_v41  ;;  %v525_v4 = vsel %vm513_vm12, %v503_v41, %v506_v54 }
 0x1cf   :  { %v519_v2 = vsel %vm515_vm14, %v503_v41, %v518_v61  ;;  %v522_v0 = vsel %vm516_vm15, %v509_v56, 920167782  ;;  %v526_v43 = vsel %vm516_vm15, %v512_v57, 1326507024  ;;  %v407_v10 = vshrl.u32 %v2065_v17, %v392_v55 }
 0x1d0   :  { %v520_v6 = vsel %vm514_vm13, %v517_v60, %v519_v2  ;;  %v523_v8 = vsel %vm515_vm14, %v506_v54, %v522_v0  ;;  %v527_v9 = vsel %vm515_vm14, %v509_v56, %v526_v43  ;;  %v405_v13 = vor.u32 %v404_v44, %v403_v58 }
 0x1d1   :  { %v524_v59 = vsel %vm514_vm13, %v521_v63, %v523_v8  ;;  %v528_v12 = vsel %vm514_vm13, %v525_v4, %v527_v9  ;;  %v406_v15 = vshll.u32 %v2064_v14, %v391_v39  ;;  %v536_v24 = vmul.u32 %v2318_v34, %v520_v6 }
 0x1d2   :  { %v2351_v18 = vmul.u32.u64.low %v2318_v34, %v528_v12  ;;  %v2352_v21 = vmul.u32.u64.high %v2318_v34, %v528_v12, %v2351_v18  ;;  %v2355_v22 = vmul.u32.u64.low %v2318_v34, %v524_v59  ;;  %v2356_v23 = vmul.u32.u64.high %v2318_v34, %v524_v59, %v2355_v22 }
 0x1d3   :  { %v408_v26 = vor.u32 %v407_v10, %v406_v15  ;;  %vm412_vm0 = vcmp.lt.s32.totalorder %v2320_v36, 4  ;;  %v394_v27 = vshll.u32 %v2060_v3, %v391_v39  ;;  %v395_v25 = vshrl.u32 %v2061_v5, %v392_v55 }
 0x1d4   :  { %v398_v62 = vshrl.u32 %v2062_v7, %v392_v55  ;;  %v397_v30 = vshll.u32 %v2061_v5, %v391_v39  ;;  %v400_v31 = vshll.u32 %v2062_v7, %v391_v39  ;;  %v401_v32 = vshrl.u32 %v2063_v11, %v392_v55 }
 0x1d5   :  { %v422_v28 = vsel %vm412_vm0, %v408_v26, 1326507024  ;;  %vm538_vm1 = vc.u32 %v2352_v21, %v2355_v22  ;;  %v539_v33 = vadd.s32 1, %v2356_v23  ;;  %v418_v34 = vsel %vm412_vm0, %v405_v13, 920167782 }
 0x1d6   :  { %v396_v46 = vor.u32 %v395_v25, %v394_v27  ;;  %v393_v35 = vshrl.u32 %v2060_v3, %v392_v55  ;;  %v399_v37 = vor.u32 %v398_v62, %v397_v30  ;;  %v402_v38 = vor.u32 %v401_v32, %v400_v31 }
 0x1d7   :  { %vm411_vm2 = vcmp.lt.s32.totalorder %v2320_v36, 3  ;;  %v540_v40 = vsel %vm538_vm1, %v539_v33, %v2356_v23  ;;  %vm409_vm3 = vcmp.lt.s32.totalorder %v2320_v36, 1  ;;  %vm410_vm4 = vcmp.lt.s32.totalorder %v2320_v36, 2 }
 0x1d8   :  { %v423_v39 = vsel %vm411_vm2, %v405_v13, %v422_v28  ;;  %v541_v47 = vadd.s32 %v540_v40, %v536_v24  ;;  %v414_v48 = vsel %vm412_vm0, %v402_v38, 2102212464  ;;  %v417_v1 = vsel %vm409_vm3, %v396_v46, %v399_v37 }
 0x1d9   :  { %v419_v49 = vsel %vm411_vm2, %v402_v38, %v418_v34  ;;  %v421_v42 = vsel %vm409_vm3, %v399_v37, %v402_v38  ;;  %v425_v51 = vshll.u32 %v385_v45, 8  ;;  %v413_v53 = vsel %vm409_vm3, %v393_v35, %v396_v46 }
 0x1da   :  { %v420_v50 = vsel %vm410_vm4, %v417_v1, %v419_v49  ;;  %v542_v52 = vadd.s32 536870912, %v541_v47  ;;  %v415_v41 = vsel %vm411_vm2, %v399_v37, %v414_v48  ;;  %v424_v54 = vsel %vm410_vm4, %v421_v42, %v423_v39 }
 0x1db   :  { %v2384_v55 = vmul.u32.u64.low %v425_v51, %v424_v54  ;;  %v2385_v56 = vmul.u32.u64.high %v425_v51, %v424_v54, %v2384_v55  ;;  %v2387_v57 = vmul.u32.u64.low %v425_v51, %v420_v50  ;;  %v2388_v58 = vmul.u32.u64.high %v425_v51, %v420_v50, %v2387_v57 }
 0x1dc   :  { %v543_v60 = vshrl.u32 %v542_v52, 30  ;;  %v416_v61 = vsel %vm410_vm4, %v413_v53, %v415_v41  ;;  %v537_v18 = vadd.s32 %v2355_v22, %v2352_v21  ;;  %vm573_vm15 = vweird.f32 %v2308_v16 }
 0x1dd   :  { %vm434_vm5 = vc.u32 %v2385_v56, %v2387_v57  ;;  %v435_v4 = vadd.s32 1, %v2388_v58  ;;  %v432_v0 = vmul.u32 %v425_v51, %v416_v61  ;;  %v433_v21 = vadd.s32 %v2387_v57, %v2385_v56 }
 0x1de   :  { %v544_v63 = vshll.u32 %v543_v60, 30  ;;  %v567_v37 = vsub.s32 4, %v543_v60  ;;  %vm469_vm3 = vweird.f32 %v2310_v19 }
 0x1df   :  { %v436_v43 = vsel %vm434_vm5, %v435_v4, %v2388_v58 }
 0x1e0   :  { %v545_v2 = vsub.s32 %v541_v47, %v544_v63  ;;  %v437_v6 = vadd.s32 %v436_v43, %v432_v0  ;;  %v568_v51 = vsel %vm483_vm8, %v567_v37, %v543_v60  ;;  %v1583_v37 = vld [vmem:[%s2768_s3 + $0x148] sm:$0xff] }
 0x1e1   :  { %v570_v41 = vsel %vm482_vm9, 0, %v568_v51 }
 0x1e2   :  { %v547_v44 = vsub.s32 0, %v545_v2  ;;  %v438_v9 = vadd.s32 536870912, %v437_v6  ;;  %v574_v58 = vadd.s32 3, %v570_v41 }
 0x1e4   :  { %v1546_v8 = vmin.u32 %v547_v44, %v545_v2  ;;  %v439_v59 = vshrl.u32 %v438_v9, 30  ;;  %v575_v60 = vand.u32 3, %v574_v58 }
 0x1e6   :  { %v549_v10 = vclz %v1546_v8  ;;  %v440_v13 = vshll.u32 %v439_v59, 30  ;;  %v463_v57 = vsub.s32 4, %v439_v59  ;;  %vm580_vm12 = vcmp.eq.s32.totalorder %v575_v60, 2 }
 0x1e7   :  { %vm577_vm13 = vcmp.eq.s32.totalorder %v575_v60, 0  ;;  %vm576_vm14 = vcmp.lt.s32.totalorder %v575_v60, 2 }
 0x1e8   :  { %v1547_v12 = vadd.s32 4294967294, %v549_v10  ;;  %v441_v36 = vsub.s32 %v437_v6, %v440_v13  ;;  %v464_v63 = vsel %vm379_vm10, %v463_v57, %v439_v59 }
 0x1e9   :  { %v466_v43 = vsel %vm378_vm11, 0, %v464_v63 }
 0x1ea   :  { %vm1548_vm6 = vcmp.lt.s32.totalorder %v1547_v12, 0  ;;  %v443_v26 = vsub.s32 0, %v441_v36  ;;  %v470_v9 = vadd.s32 3, %v466_v43 }
 0x1eb   :  { %v552_v15 = vsel %vm1548_vm6, 0, %v1547_v12 }
 0x1ec   :  { %v553_v23 = vsub.s32 32, %v552_v15  ;;  %v557_v24 = vsub.s32 4294967266, %v552_v15  ;;  %v554_v45 = vshll.u32 %v545_v2, %v552_v15  ;;  %v1542_v62 = vmin.u32 %v443_v26, %v441_v36 }
 0x1ed   :  { %v471_v12 = vand.u32 3, %v470_v9 }
 0x1ee   :  { %v555_v27 = vshrl.u32 %v537_v18, %v553_v23  ;;  %v558_v25 = vadd.s32 127, %v557_v24  ;;  %v445_v31 = vclz %v1542_v62  ;;  %v1576_v62 = vld [vmem:[%s2768_s3 + $0x110] sm:$0xff] }
 0x1ef   :  { %vm476_vm0 = vcmp.eq.s32.totalorder %v471_v12, 2  ;;  %vm473_vm1 = vcmp.eq.s32.totalorder %v471_v12, 0  ;;  %vm472_vm2 = vcmp.lt.s32.totalorder %v471_v12, 2 }
 0x1f0   :  { %v556_v28 = vor.u32 %v555_v27, %v554_v45  ;;  %v559_v30 = vshll.u32 %v558_v25, 23  ;;  %v1543_v33 = vadd.s32 4294967294, %v445_v31  ;;  %v1575_v27 = vld [vmem:[%s2768_s3 + $0x108] sm:$0xff] }
 0x1f1   :  { %v1579_v31 = vld [vmem:[%s2768_s3 + $0x128] sm:$0xff] }
 0x1f2   :  { %v560_v32 = vor.u32 4788187, %v559_v30  ;;  %v563_v46 = vcvt.s32.f32 %v556_v28  ;;  %vm1544_vm7 = vcmp.lt.s32.totalorder %v1543_v33, 0  ;;  %v1578_v30 = vld [vmem:[%s2768_s3 + $0x120] sm:$0xff] }
 0x1f3   :  { %v448_v35 = vsel %vm1544_vm7, 0, %v1543_v33  ;;  %v1580_v33 = vld [vmem:[%s2768_s3 + $0x130] sm:$0xff] }
 0x1f4   :  { %v561_v34 = vand.u32 2147483647, %v560_v32  ;;  %v449_v22 = vsub.s32 32, %v448_v35  ;;  %v453_v40 = vsub.s32 4294967266, %v448_v35  ;;  %v450_v47 = vshll.u32 %v441_v36, %v448_v35 }
 0x1f5   :  { %v1910_v32 = vpack.c.bf16 %v1579_v31, %v1578_v30 }
 0x1f6   :  { %v564_v38 = vmul.f32 %v563_v46, %v561_v34  ;;  %v451_v48 = vshrl.u32 %v433_v21, %v449_v22  ;;  %v454_v1 = vadd.s32 127, %v453_v40  ;;  %v1581_v34 = vld [vmem:[%s2768_s3 + $0x138] sm:$0xff]  ;;  %v1582_v46 = vld [vmem:[%s2768_s3 + $0x140] sm:$0xff]  ;;  %v1584_v21 = vld [vmem:[%s2768_s3 + $0x150] sm:$0xff] }
 0x1f7   :  { %v1914_v35 = vpack.c.bf16 %v1581_v34, %v1580_v33  ;;  %v1585_v22 = vld [vmem:[%s2768_s3 + $0x158] sm:$0xff] }
 0x1f8   :  { %v565_v39 = vxor.u32 2147483648, %v564_v38  ;;  %v452_v50 = vor.u32 %v451_v48, %v450_v47  ;;  %v455_v42 = vshll.u32 %v454_v1, 23  ;;  %v1922_v40 = vpack.c.bf16 %v1585_v22, %v1584_v21  ;;  %v1587_v47 = vld [vmem:[%s2768_s3 + $0x168] sm:$0xff]  ;;  %v1588_v1 = vld [vmem:[%s2768_s3 + $0x170] sm:$0xff] }
 0x1fa   :  { %v566_v49 = vsel %vm483_vm8, %v565_v39, %v564_v38  ;;  %v456_v53 = vor.u32 4788187, %v455_v42  ;;  %v459_v55 = vcvt.s32.f32 %v452_v50  ;;  %v1918_v38 = vpack.c.bf16 %v1583_v37, %v1582_v46  ;;  %v1586_v39 = vld [vmem:[%s2768_s3 + $0x160] sm:$0xff] }
 0x1fb   :  { %v569_v52 = vsel %vm482_vm9, %v2308_v16, %v566_v49  ;;  %v1574_v16 = vld [vmem:[%s2768_s3 + $0x100] sm:$0xff]  ;;  %v1926_v48 = vpack.c.bf16 %v1587_v47, %v1586_v39  ;;  %v1589_v49 = vld [vmem:[%s2768_s3 + $0x178] sm:$0xff] }
 0x1fc   :  { %2026 = vcosq.f32 %v569_v52  ;;  %v457_v54 = vand.u32 2147483647, %v456_v53  ;;  %v1902_v25 = vpack.c.bf16 %v1575_v27, %v1574_v16  ;;  %v1930_v50 = vpack.c.bf16 %v1589_v49, %v1588_v1  ;;  %v1565_v42 = vld [vmem:[%s2771_s4 + $0x1] ss:$0 sm:$0xff] }
 0x1fd   :  { %2028 = vsinq.f32 %v569_v52 }
 0x1fe   :  { %v460_v56 = vmul.f32 %v459_v55, %v457_v54  ;;  %1903 = vmatprep.subr.bf16.mxu0 %v1902_v25 }
 0x1ff   :  { %1905 = vmatpush3.bf16.msra.mxu0 %v1902_v25 }
 0x200   :  { %v461_v61 = vxor.u32 2147483648, %v460_v56 }
 0x202   :  { %v462_v20 = vsel %vm379_vm10, %v461_v61, %v460_v56 }
 0x203   :  { %v465_v4 = vsel %vm378_vm11, %v2310_v19, %v462_v20  ;;  %v1577_v19 = vld [vmem:[%s2768_s3 + $0x118] sm:$0xff] }
 0x204   :  { %2030 = vcosq.f32 %v465_v4  ;;  %v1906_v28 = vpack.c.bf16 %v1577_v19, %v1576_v62 }
 0x205   :  { %2032 = vsinq.f32 %v465_v4 }
 0x206   :  { %v2027_v2 = vpop.eup %2026  ;;  %1907 = vmatprep.subr.bf16.mxu0 %v1906_v28 }
 0x207   :  { %v2029_v0 = vpop.eup %2028  ;;  %v581_v44 = vxor.u32 2147483648, %v2027_v2  ;;  %1909 = vmatpush3.bf16.msra.mxu0 %v1906_v28 }
 0x208   :  { %v578_v6 = vxor.u32 2147483648, %v2029_v0  ;;  %1911 = vmatprep.subr.bf16.mxu0 %v1910_v32 }
 0x209   :  { %v582_v8 = vsel %vm580_vm12, %v581_v44, %v2029_v0 }
 0x20a   :  { %v579_v10 = vsel %vm577_vm13, %v2027_v2, %v578_v6 }
 0x20b   :  { %v583_v29 = vsel %vm576_vm14, %v579_v10, %v582_v8  ;;  %1913 = vmatpush3.bf16.msra.mxu0 %v1910_v32 }
 0x20c   :  { %v584_v59 = vsel %vm573_vm15, nan, %v583_v29  ;;  %1915 = vmatprep.subr.bf16.mxu0 %v1914_v35 }
 0x20e   :  { %v2031_v13 = vpop.eup %2030 }
 0x20f   :  { %v2033_v36 = vpop.eup %2032  ;;  %v477_v15 = vxor.u32 2147483648, %v2031_v13  ;;  %1917 = vmatpush3.bf16.msra.mxu0 %v1914_v35 }
 0x210   :  { %v474_v18 = vxor.u32 2147483648, %v2033_v36  ;;  %1919 = vmatprep.subr.bf16.mxu0 %v1918_v38 }
 0x211   :  { %v478_v23 = vsel %vm476_vm0, %v477_v15, %v2033_v36 }
 0x212   :  { %v475_v24 = vsel %vm473_vm1, %v2031_v13, %v474_v18 }
 0x213   :  { %v479_v26 = vsel %vm472_vm2, %v475_v24, %v478_v23  ;;  %1921 = vmatpush3.bf16.msra.mxu0 %v1918_v38 }
 0x214   :  { %v480_v45 = vsel %vm469_vm3, nan, %v479_v26  ;;  %1923 = vmatprep.subr.bf16.mxu0 %v1922_v40 }
 0x215   :  { %1765 = vmatprep.mubr.f32.mxu1 %v480_v45 }
 0x216   :  { %1766 = vmatmul.mubr.f32.vlgmr.msra.gmra.mrb[0].mxu1 %v584_v59 }
 0x217   :  { %1925 = vmatpush3.bf16.msra.mxu0 %v1922_v40 }
 0x218   :  { %1927 = vmatprep.subr.bf16.mxu0 %v1926_v48 }
 0x21b   :  { %1929 = vmatpush3.bf16.msra.mxu0 %v1926_v48 }
 0x21c   :  { %1931 = vmatprep.subr.bf16.mxu0 %v1930_v50 }
 0x21f   :  { %1933 = vmatpush3.bf16.msra.mxu0 %v1930_v50 }
 0x2e9   :  { %v1767_v51 = vpop.f32.mrb[0].mxu1 }
 0x2ea   :  { %v2458_v52 = vadd.f32 %v1767_v51, %v1565_v42  ;;  %v673_v53 = vpop.f32.mrb[1].mxu1 }
 0x2eb   :  { %v2460_v41 = vadd.f32 %v1565_v42, %v673_v53 }
 0x2ec   :  { %v786_v54 = vand.u32 2147483647, %v2458_v52  ;;  %v789_v55 = vand.u32 2139095040, %v2458_v52  ;;  %vm788_vm2 = vcmp.lt.s32.totalorder %v2458_v52, 0 }
 0x2ed   :  { %v685_v56 = vand.u32 2139095040, %v2460_v41  ;;  %v682_v61 = vand.u32 2147483647, %v2460_v41 }
 0x2ee   :  { %v790_v57 = vshrl.u32 %v789_v55, 23  ;;  %v793_v58 = vand.u32 8388607, %v786_v54  ;;  %vm787_vm3 = vcmp.le.f32.partialorder %v786_v54, 0.7853982 }
 0x2ef   :  { %v686_v20 = vshrl.u32 %v685_v56, 23  ;;  %v689_v0 = vand.u32 8388607, %v682_v61 }
 0x2f0   :  { %v1570_v63 = vadd.s32 4294967169, %v790_v57  ;;  %v794_v2 = vor.u32 8388608, %v793_v58 }
 0x2f1   :  { %v1566_v60 = vadd.s32 4294967169, %v686_v20  ;;  %v690_v29 = vor.u32 8388608, %v689_v0 }
 0x2f2   :  { %v796_v4 = vadd.s32 1, %v1570_v63  ;;  %v2470_v10 = vshll.u32 %v794_v2, 8 }
 0x2f3   :  { %v692_v43 = vadd.s32 1, %v1566_v60 }
 0x2f4   :  { %vm797_vm4 = vcmp.gt.s32.totalorder %v796_v4, 0 }
 0x2f5   :  { %v798_v44 = vsel %vm797_vm4, %v796_v4, 0  ;;  %vm693_vm5 = vcmp.gt.s32.totalorder %v692_v43, 0  ;;  %vm684_vm4 = vcmp.lt.s32.totalorder %v2460_v41, 0 }
 0x2f6   :  { %v799_v6 = vshrl.u32 %v798_v44, 5  ;;  %v800_v8 = vand.u32 31, %v798_v44  ;;  %v694_v9 = vsel %vm693_vm5, %v692_v43, 0  ;;  %v730_v43 = vshll.u32 %v690_v29, 8 }
 0x2f7   :  { %v2473_v13 = vshrl.u32 %v694_v9, 5  ;;  %v696_v36 = vand.u32 31, %v694_v9  ;;  %vm683_vm5 = vcmp.le.f32.partialorder %v682_v61, 0.7853982 }
 0x2f8   :  { %v801_v59 = vsub.s32 32, %v800_v8  ;;  %v803_v12 = vshll.u32 %v2060_v3, %v800_v8  ;;  %v806_v15 = vshll.u32 %v2061_v5, %v800_v8  ;;  %v809_v18 = vshll.u32 %v2062_v7, %v800_v8 }
 0x2f9   :  { %v812_v23 = vshll.u32 %v2063_v11, %v800_v8  ;;  %v815_v24 = vshll.u32 %v2064_v14, %v800_v8  ;;  %vm818_vm6 = vcmp.lt.s32.totalorder %v799_v6, 1  ;;  %vm819_vm7 = vcmp.lt.s32.totalorder %v799_v6, 2 }
 0x2fa   :  { %v804_v26 = vshrl.u32 %v2061_v5, %v801_v59  ;;  %v807_v45 = vshrl.u32 %v2062_v7, %v801_v59  ;;  %v810_v16 = vshrl.u32 %v2063_v11, %v801_v59  ;;  %v802_v27 = vshrl.u32 %v2060_v3, %v801_v59 }
 0x2fb   :  { %v813_v25 = vshrl.u32 %v2064_v14, %v801_v59  ;;  %v816_v62 = vshrl.u32 %v2065_v17, %v801_v59  ;;  %v697_v31 = vsub.s32 32, %v696_v36  ;;  %vm820_vm8 = vcmp.lt.s32.totalorder %v799_v6, 3 }
 0x2fc   :  { %v805_v19 = vor.u32 %v804_v26, %v803_v12  ;;  %v808_v28 = vor.u32 %v807_v45, %v806_v15  ;;  %v811_v30 = vor.u32 %v810_v16, %v809_v18  ;;  %vm821_vm9 = vcmp.lt.s32.totalorder %v799_v6, 4 }
 0x2fd   :  { %v814_v32 = vor.u32 %v813_v25, %v812_v23  ;;  %v817_v33 = vor.u32 %v816_v62, %v815_v24  ;;  %v699_v40 = vshll.u32 %v2060_v3, %v696_v36  ;;  %v700_v48 = vshrl.u32 %v2061_v5, %v697_v31 }
 0x2fe   :  { %v822_v34 = vsel %vm818_vm6, %v802_v27, %v805_v19  ;;  %v823_v46 = vsel %vm821_vm9, %v811_v30, 2102212464  ;;  %v826_v35 = vsel %vm818_vm6, %v805_v19, %v808_v28  ;;  %v830_v37 = vsel %vm818_vm6, %v808_v28, %v811_v30 }
 0x2ff   :  { %v824_v38 = vsel %vm820_vm8, %v808_v28, %v823_v46  ;;  %v827_v21 = vsel %vm821_vm9, %v814_v32, 920167782  ;;  %v831_v22 = vsel %vm821_vm9, %v817_v33, 1326507024  ;;  %v702_v1 = vshll.u32 %v2061_v5, %v696_v36 }
 0x300   :  { %v828_v39 = vsel %vm820_vm8, %v811_v30, %v827_v21  ;;  %v832_v47 = vsel %vm820_vm8, %v814_v32, %v831_v22  ;;  %v825_v49 = vsel %vm819_vm7, %v822_v34, %v824_v38  ;;  %v703_v51 = vshrl.u32 %v2062_v7, %v697_v31 }
 0x301   :  { %v829_v50 = vsel %vm819_vm7, %v826_v35, %v828_v39  ;;  %v833_v42 = vsel %vm819_vm7, %v830_v37, %v832_v47  ;;  %v701_v58 = vor.u32 %v700_v48, %v699_v40  ;;  %v705_v63 = vshll.u32 %v2062_v7, %v696_v36 }
 0x302   :  { %v2496_v53 = vmul.u32.u64.low %v2470_v10, %v833_v42  ;;  %v2497_v55 = vmul.u32.u64.high %v2470_v10, %v833_v42, %v2496_v53  ;;  %v2500_v56 = vmul.u32.u64.low %v2470_v10, %v829_v50  ;;  %v2501_v57 = vmul.u32.u64.high %v2470_v10, %v829_v50, %v2500_v56 }
 0x303   :  { %v704_v20 = vor.u32 %v703_v51, %v702_v1  ;;  %v706_v60 = vshrl.u32 %v2063_v11, %v697_v31  ;;  %v708_v4 = vshll.u32 %v2063_v11, %v696_v36  ;;  %v709_v2 = vshrl.u32 %v2064_v14, %v697_v31 }
 0x304   :  { %v712_v0 = vshrl.u32 %v2065_v17, %v697_v31  ;;  %v841_v44 = vmul.u32 %v2470_v10, %v825_v49  ;;  %v698_v6 = vshrl.u32 %v2060_v3, %v697_v31  ;;  %v711_v9 = vshll.u32 %v2064_v14, %v696_v36 }
 0x305   :  { %v707_v8 = vor.u32 %v706_v60, %v705_v63  ;;  %vm843_vm10 = vc.u32 %v2497_v55, %v2500_v56  ;;  %v844_v59 = vadd.s32 1, %v2501_v57  ;;  %v710_v12 = vor.u32 %v709_v2, %v708_v4 }
 0x306   :  { %vm714_vm11 = vcmp.lt.s32.totalorder %v2473_v13, 1  ;;  %v713_v15 = vor.u32 %v712_v0, %v711_v9  ;;  %vm716_vm12 = vcmp.lt.s32.totalorder %v2473_v13, 3  ;;  %vm717_vm13 = vcmp.lt.s32.totalorder %v2473_v13, 4 }
 0x307   :  { %v722_v29 = vsel %vm714_vm11, %v701_v58, %v704_v20  ;;  %v845_v10 = vsel %vm843_vm10, %v844_v59, %v2501_v57  ;;  %v719_v18 = vsel %vm717_vm13, %v707_v8, 2102212464  ;;  %v723_v23 = vsel %vm717_vm13, %v710_v12, 920167782 }
 0x308   :  { %v726_v24 = vsel %vm714_vm11, %v704_v20, %v707_v8  ;;  %v846_v26 = vadd.s32 %v845_v10, %v841_v44  ;;  %vm715_vm14 = vcmp.lt.s32.totalorder %v2473_v13, 2  ;;  %v724_v36 = vsel %vm716_vm12, %v707_v8, %v723_v23 }
 0x309   :  { %v727_v45 = vsel %vm717_vm13, %v713_v15, 1326507024  ;;  %v718_v16 = vsel %vm714_vm11, %v698_v6, %v701_v58  ;;  %v720_v27 = vsel %vm716_vm12, %v704_v20, %v719_v18  ;;  %v725_v25 = vsel %vm715_vm14, %v722_v29, %v724_v36 }
 0x30a   :  { %v728_v62 = vsel %vm716_vm12, %v710_v12, %v727_v45  ;;  %v847_v19 = vadd.s32 536870912, %v846_v26  ;;  %v2518_v30 = vmul.u32.u64.low %v730_v43, %v725_v25  ;;  %v2519_v31 = vmul.u32.u64.high %v730_v43, %v725_v25, %v2518_v30 }
 0x30b   :  { %v729_v28 = vsel %vm715_vm14, %v726_v24, %v728_v62  ;;  %v721_v46 = vsel %vm715_vm14, %v718_v16, %v720_v27  ;;  %v842_v57 = vadd.s32 %v2500_v56, %v2497_v55  ;;  %vm878_vm9 = vweird.f32 %v2458_v52 }
 0x30c   :  { %v2521_v32 = vmul.u32.u64.low %v730_v43, %v729_v28  ;;  %v2522_v33 = vmul.u32.u64.high %v730_v43, %v729_v28, %v2521_v32  ;;  %v848_v34 = vshrl.u32 %v847_v19, 30  ;;  %v740_v37 = vadd.s32 1, %v2519_v31 }
 0x30d   :  { %v737_v13 = vmul.u32 %v730_v43, %v721_v46  ;;  %vm774_vm13 = vweird.f32 %v2460_v41 }
 0x30e   :  { %v849_v35 = vshll.u32 %v848_v34, 30  ;;  %vm739_vm15 = vc.u32 %v2522_v33, %v2518_v30  ;;  %v738_v15 = vadd.s32 %v2518_v30, %v2522_v33  ;;  %v872_v56 = vsub.s32 4, %v848_v34 }
 0x30f   :  { %v741_v21 = vsel %vm739_vm15, %v740_v37, %v2519_v31 }
 0x310   :  { %v850_v38 = vsub.s32 %v846_v26, %v849_v35  ;;  %v742_v22 = vadd.s32 %v741_v21, %v737_v13  ;;  %v873_v27 = vsel %vm788_vm2, %v872_v56, %v848_v34 }
 0x311   :  { %v875_v30 = vsel %vm787_vm3, 0, %v873_v27 }
 0x312   :  { %v852_v40 = vsub.s32 0, %v850_v38  ;;  %v743_v39 = vadd.s32 536870912, %v742_v22  ;;  %v879_v33 = vadd.s32 3, %v875_v30 }
 0x314   :  { %v1571_v47 = vmin.u32 %v852_v40, %v850_v38  ;;  %v744_v48 = vshrl.u32 %v743_v39, 30  ;;  %v880_v37 = vand.u32 3, %v879_v33 }
 0x316   :  { %v854_v1 = vclz %v1571_v47  ;;  %v745_v49 = vshll.u32 %v744_v48, 30  ;;  %v768_v32 = vsub.s32 4, %v744_v48  ;;  %vm885_vm6 = vcmp.eq.s32.totalorder %v880_v37, 2 }
 0x317   :  { %vm882_vm7 = vcmp.eq.s32.totalorder %v880_v37, 0  ;;  %vm881_vm8 = vcmp.lt.s32.totalorder %v880_v37, 2 }
 0x318   :  { %v1572_v50 = vadd.s32 4294967294, %v854_v1  ;;  %v746_v42 = vsub.s32 %v742_v22, %v745_v49  ;;  %v769_v54 = vsel %vm684_vm4, %v768_v32, %v744_v48 }
 0x31a   :  { %vm1573_vm0 = vcmp.lt.s32.totalorder %v1572_v50, 0  ;;  %v748_v53 = vsub.s32 0, %v746_v42 }
 0x31b   :  { %v857_v51 = vsel %vm1573_vm0, 0, %v1572_v50 }
 0x31c   :  { %v858_v58 = vsub.s32 32, %v857_v51  ;;  %v862_v20 = vsub.s32 4294967266, %v857_v51  ;;  %v1567_v63 = vmin.u32 %v748_v53, %v746_v42  ;;  %v859_v60 = vshll.u32 %v850_v38, %v857_v51 }
 0x31d   :  { %v771_v38 = vsel %vm683_vm5, 0, %v769_v54 }
 0x31e   :  { %v860_v4 = vshrl.u32 %v842_v57, %v858_v58  ;;  %v863_v2 = vadd.s32 127, %v862_v20  ;;  %v750_v0 = vclz %v1567_v63  ;;  %v775_v39 = vadd.s32 3, %v771_v38 }
 0x320   :  { %v861_v43 = vor.u32 %v860_v4, %v859_v60  ;;  %v864_v44 = vshll.u32 %v863_v2, 23  ;;  %v1568_v6 = vadd.s32 4294967294, %v750_v0  ;;  %v776_v49 = vand.u32 3, %v775_v39  ;;  %v1600_v60 = vld [vmem:[%s2768_s3 + $0x188] sm:$0xff]  ;;  %v1601_v2 = vld [vmem:[%s2768_s3 + $0x190] sm:$0xff] }
 0x322   :  { %v865_v8 = vor.u32 4788187, %v864_v44  ;;  %vm1569_vm1 = vcmp.lt.s32.totalorder %v1568_v6, 0  ;;  %v868_v59 = vcvt.s32.f32 %v861_v43  ;;  %vm781_vm10 = vcmp.eq.s32.totalorder %v776_v49, 2  ;;  %v1603_v43 = vld [vmem:[%s2768_s3 + $0x1a0] sm:$0xff]  ;;  %v1604_v44 = vld [vmem:[%s2768_s3 + $0x1a8] sm:$0xff] }
 0x323   :  { %v753_v12 = vsel %vm1569_vm1, 0, %v1568_v6  ;;  %vm778_vm11 = vcmp.eq.s32.totalorder %v776_v49, 0  ;;  %vm777_vm12 = vcmp.lt.s32.totalorder %v776_v49, 2  ;;  %v1942_v6 = vpack.c.bf16 %v1604_v44, %v1603_v43 }
 0x324   :  { %v866_v9 = vand.u32 2147483647, %v865_v8  ;;  %v754_v29 = vsub.s32 32, %v753_v12  ;;  %v758_v10 = vsub.s32 4294967266, %v753_v12  ;;  %v755_v18 = vshll.u32 %v746_v42, %v753_v12  ;;  %v1605_v8 = vld [vmem:[%s2768_s3 + $0x1b0] sm:$0xff] }
 0x326   :  { %v869_v55 = vmul.f32 %v868_v59, %v866_v9  ;;  %v756_v23 = vshrl.u32 %v738_v15, %v754_v29  ;;  %v759_v24 = vadd.s32 127, %v758_v10  ;;  %v1606_v9 = vld [vmem:[%s2768_s3 + $0x1b8] sm:$0xff]  ;;  %v1607_v59 = vld [vmem:[%s2768_s3 + $0x1c0] sm:$0xff]  ;;  %v1608_v15 = vld [vmem:[%s2768_s3 + $0x1c8] sm:$0xff] }
 0x327   :  { %v1946_v12 = vpack.c.bf16 %v1606_v9, %v1605_v8  ;;  %v1950_v29 = vpack.c.bf16 %v1608_v15, %v1607_v59  ;;  %v1609_v10 = vld [vmem:[%s2768_s3 + $0x1d0] sm:$0xff] }
 0x328   :  { %v870_v26 = vxor.u32 2147483648, %v869_v55  ;;  %v757_v36 = vor.u32 %v756_v23, %v755_v18  ;;  %v760_v45 = vshll.u32 %v759_v24, 23  ;;  %v1611_v18 = vld [vmem:[%s2768_s3 + $0x1e0] sm:$0xff]  ;;  %v1612_v23 = vld [vmem:[%s2768_s3 + $0x1e8] sm:$0xff] }
 0x329   :  { %v1958_v24 = vpack.c.bf16 %v1612_v23, %v1611_v18 }
 0x32a   :  { %v871_v16 = vsel %vm788_vm2, %v870_v26, %v869_v55  ;;  %v761_v62 = vor.u32 4788187, %v760_v45  ;;  %v764_v28 = vcvt.s32.f32 %v757_v36  ;;  %v1610_v55 = vld [vmem:[%s2768_s3 + $0x1d8] sm:$0xff]  ;;  %v1613_v26 = vld [vmem:[%s2768_s3 + $0x1f0] sm:$0xff] }
 0x32b   :  { %v874_v25 = vsel %vm787_vm3, %v2458_v52, %v871_v16  ;;  %v1599_v52 = vld [vmem:[%s2768_s3 + $0x180] sm:$0xff]  ;;  %v1954_v56 = vpack.c.bf16 %v1610_v55, %v1609_v10  ;;  %v1614_v36 = vld [vmem:[%s2768_s3 + $0x1f8] sm:$0xff] }
 0x32c   :  { %2034 = vcosq.f32 %v874_v25  ;;  %v762_v19 = vand.u32 2147483647, %v761_v62  ;;  %v1934_v4 = vpack.c.bf16 %v1600_v60, %v1599_v52  ;;  %v1962_v45 = vpack.c.bf16 %v1614_v36, %v1613_v26  ;;  %v1590_v16 = vld [vmem:[%s2771_s4 + $0x2] ss:$0 sm:$0xff] }
 0x32d   :  { %2036 = vsinq.f32 %v874_v25 }
 0x32e   :  { %v765_v31 = vmul.f32 %v764_v28, %v762_v19  ;;  %1935 = vmatprep.subr.bf16.mxu1 %v1934_v4 }
 0x32f   :  { %1937 = vmatpush3.bf16.msra.mxu1 %v1934_v4 }
 0x330   :  { %v766_v46 = vxor.u32 2147483648, %v765_v31 }
 0x332   :  { %v767_v35 = vsel %vm684_vm4, %v766_v46, %v765_v31 }
 0x333   :  { %v770_v34 = vsel %vm683_vm5, %v2460_v41, %v767_v35  ;;  %v1602_v41 = vld [vmem:[%s2768_s3 + $0x198] sm:$0xff] }
 0x334   :  { %2038 = vcosq.f32 %v770_v34  ;;  %v1938_v0 = vpack.c.bf16 %v1602_v41, %v1601_v2 }
 0x335   :  { %2040 = vsinq.f32 %v770_v34 }
 0x336   :  { %v2035_v13 = vpop.eup %2034  ;;  %1939 = vmatprep.subr.bf16.mxu1 %v1938_v0 }
 0x337   :  { %v2037_v21 = vpop.eup %2036  ;;  %v886_v22 = vxor.u32 2147483648, %v2035_v13  ;;  %1941 = vmatpush3.bf16.msra.mxu1 %v1938_v0 }
 0x338   :  { %v883_v40 = vxor.u32 2147483648, %v2037_v21  ;;  %1943 = vmatprep.subr.bf16.mxu1 %v1942_v6 }
 0x339   :  { %v887_v47 = vsel %vm885_vm6, %v886_v22, %v2037_v21 }
 0x33a   :  { %v884_v1 = vsel %vm882_vm7, %v2035_v13, %v883_v40 }
 0x33b   :  { %v888_v61 = vsel %vm881_vm8, %v884_v1, %v887_v47  ;;  %1945 = vmatpush3.bf16.msra.mxu1 %v1942_v6 }
 0x33c   :  { %v889_v48 = vsel %vm878_vm9, nan, %v888_v61  ;;  %1947 = vmatprep.subr.bf16.mxu1 %v1946_v12 }
 0x33e   :  { %v2039_v50 = vpop.eup %2038 }
 0x33f   :  { %v2041_v42 = vpop.eup %2040  ;;  %v782_v51 = vxor.u32 2147483648, %v2039_v50  ;;  %1949 = vmatpush3.bf16.msra.mxu1 %v1946_v12 }
 0x340   :  { %v779_v53 = vxor.u32 2147483648, %v2041_v42  ;;  %1951 = vmatprep.subr.bf16.mxu1 %v1950_v29 }
 0x341   :  { %v783_v57 = vsel %vm781_vm10, %v782_v51, %v2041_v42 }
 0x342   :  { %v780_v58 = vsel %vm778_vm11, %v2039_v50, %v779_v53 }
 0x343   :  { %v784_v20 = vsel %vm777_vm12, %v780_v58, %v783_v57  ;;  %1953 = vmatpush3.bf16.msra.mxu1 %v1950_v29 }
 0x344   :  { %v785_v63 = vsel %vm774_vm13, nan, %v784_v20  ;;  %1955 = vmatprep.subr.bf16.mxu1 %v1954_v56 }
 0x345   :  { %1800 = vmatprep.mubr.f32.mxu0 %v785_v63 }
 0x346   :  { %1801 = vmatmul.mubr.f32.vlgmr.msra.gmra.mrb[2].mxu0 %v889_v48 }
 0x347   :  { %1957 = vmatpush3.bf16.msra.mxu1 %v1954_v56 }
 0x348   :  { %1959 = vmatprep.subr.bf16.mxu1 %v1958_v24 }
 0x34b   :  { %1961 = vmatpush3.bf16.msra.mxu1 %v1958_v24 }
 0x34c   :  { %1963 = vmatprep.subr.bf16.mxu1 %v1962_v45 }
 0x34f   :  { %1965 = vmatpush3.bf16.msra.mxu1 %v1962_v45 }
 0x419   :  { %v1802_v27 = vpop.f32.mrb[2].mxu0 }
 0x41a   :  { %v2590_v25 = vadd.f32 %v1802_v27, %v1590_v16  ;;  %v978_v62 = vpop.f32.mrb[3].mxu0 }
 0x41b   :  { %v2592_v19 = vadd.f32 %v1590_v16, %v978_v62 }
 0x41c   :  { %v1091_v28 = vand.u32 2147483647, %v2590_v25  ;;  %v1094_v30 = vand.u32 2139095040, %v2590_v25  ;;  %vm1093_vm12 = vcmp.lt.s32.totalorder %v2590_v25, 0 }
 0x41d   :  { %v990_v31 = vand.u32 2139095040, %v2592_v19  ;;  %v987_v46 = vand.u32 2147483647, %v2592_v19 }
 0x41e   :  { %v1095_v32 = vshrl.u32 %v1094_v30, 23  ;;  %v1098_v33 = vand.u32 8388607, %v1091_v28  ;;  %vm1092_vm13 = vcmp.le.f32.partialorder %v1091_v28, 0.7853982 }
 0x41f   :  { %v991_v35 = vshrl.u32 %v990_v31, 23  ;;  %v994_v38 = vand.u32 8388607, %v987_v46 }
 0x420   :  { %v1595_v54 = vadd.s32 4294967169, %v1095_v32  ;;  %v1099_v13 = vor.u32 8388608, %v1098_v33 }
 0x421   :  { %v1591_v34 = vadd.s32 4294967169, %v991_v35  ;;  %v995_v61 = vor.u32 8388608, %v994_v38 }
 0x422   :  { %v1101_v37 = vadd.s32 1, %v1595_v54  ;;  %v2602_v1 = vshll.u32 %v1099_v13, 8 }
 0x423   :  { %v997_v21 = vadd.s32 1, %v1591_v34 }
 0x424   :  { %vm1102_vm14 = vcmp.gt.s32.totalorder %v1101_v37, 0 }
 0x425   :  { %v1103_v22 = vsel %vm1102_vm14, %v1101_v37, 0  ;;  %vm998_vm15 = vcmp.gt.s32.totalorder %v997_v21, 0  ;;  %vm989_vm14 = vcmp.lt.s32.totalorder %v2592_v19, 0 }
 0x426   :  { %v1104_v40 = vshrl.u32 %v1103_v22, 5  ;;  %v1105_v39 = vand.u32 31, %v1103_v22  ;;  %v999_v47 = vsel %vm998_vm15, %v997_v21, 0  ;;  %v1035_v21 = vshll.u32 %v995_v61, 8 }
 0x427   :  { %v2605_v50 = vshrl.u32 %v999_v47, 5  ;;  %v1001_v42 = vand.u32 31, %v999_v47  ;;  %vm988_vm15 = vcmp.le.f32.partialorder %v987_v46, 0.7853982 }
 0x428   :  { %v1106_v48 = vsub.s32 32, %v1105_v39  ;;  %v1108_v49 = vshll.u32 %v2060_v3, %v1105_v39  ;;  %v1111_v51 = vshll.u32 %v2061_v5, %v1105_v39  ;;  %v1114_v53 = vshll.u32 %v2062_v7, %v1105_v39 }
 0x429   :  { %v1117_v57 = vshll.u32 %v2063_v11, %v1105_v39  ;;  %v1120_v58 = vshll.u32 %v2064_v14, %v1105_v39  ;;  %vm1123_vm0 = vcmp.lt.s32.totalorder %v1104_v40, 1  ;;  %vm1124_vm1 = vcmp.lt.s32.totalorder %v1104_v40, 2 }
 0x42a   :  { %v1109_v20 = vshrl.u32 %v2061_v5, %v1106_v48  ;;  %v1112_v63 = vshrl.u32 %v2062_v7, %v1106_v48  ;;  %v1115_v52 = vshrl.u32 %v2063_v11, %v1106_v48  ;;  %v1107_v60 = vshrl.u32 %v2060_v3, %v1106_v48 }
 0x42b   :  { %v1118_v4 = vshrl.u32 %v2064_v14, %v1106_v48  ;;  %v1121_v2 = vshrl.u32 %v2065_v17, %v1106_v48  ;;  %v1002_v44 = vsub.s32 32, %v1001_v42  ;;  %vm1125_vm2 = vcmp.lt.s32.totalorder %v1104_v40, 3 }
 0x42c   :  { %v1110_v41 = vor.u32 %v1109_v20, %v1108_v49  ;;  %v1113_v0 = vor.u32 %v1112_v63, %v1111_v51  ;;  %v1116_v43 = vor.u32 %v1115_v52, %v1114_v53  ;;  %vm1126_vm3 = vcmp.lt.s32.totalorder %v1104_v40, 4 }
 0x42d   :  { %v1119_v6 = vor.u32 %v1118_v4, %v1117_v57  ;;  %v1122_v8 = vor.u32 %v1121_v2, %v1120_v58  ;;  %v1004_v56 = vshll.u32 %v2060_v3, %v1001_v42  ;;  %v1005_v24 = vshrl.u32 %v2061_v5, %v1002_v44 }
 0x42e   :  { %v1127_v9 = vsel %vm1123_vm0, %v1107_v60, %v1110_v41  ;;  %v1128_v59 = vsel %vm1126_vm3, %v1116_v43, 2102212464  ;;  %v1131_v12 = vsel %vm1123_vm0, %v1110_v41, %v1113_v0  ;;  %v1135_v15 = vsel %vm1123_vm0, %v1113_v0, %v1116_v43 }
 0x42f   :  { %v1129_v29 = vsel %vm1125_vm2, %v1113_v0, %v1128_v59  ;;  %v1132_v10 = vsel %vm1126_vm3, %v1119_v6, 920167782  ;;  %v1136_v55 = vsel %vm1126_vm3, %v1122_v8, 1326507024  ;;  %v1007_v26 = vshll.u32 %v2061_v5, %v1001_v42 }
 0x430   :  { %v1133_v18 = vsel %vm1125_vm2, %v1116_v43, %v1132_v10  ;;  %v1137_v23 = vsel %vm1125_vm2, %v1119_v6, %v1136_v55  ;;  %v1130_v36 = vsel %vm1124_vm1, %v1127_v9, %v1129_v29  ;;  %v1008_v27 = vshrl.u32 %v2062_v7, %v1002_v44 }
 0x431   :  { %v1134_v45 = vsel %vm1124_vm1, %v1131_v12, %v1133_v18  ;;  %v1138_v16 = vsel %vm1124_vm1, %v1135_v15, %v1137_v23  ;;  %v1006_v33 = vor.u32 %v1005_v24, %v1004_v56  ;;  %v1010_v54 = vshll.u32 %v2062_v7, %v1001_v42 }
 0x432   :  { %v2628_v62 = vmul.u32.u64.low %v2602_v1, %v1138_v16  ;;  %v2629_v30 = vmul.u32.u64.high %v2602_v1, %v1138_v16, %v2628_v62  ;;  %v2632_v31 = vmul.u32.u64.low %v2602_v1, %v1134_v45  ;;  %v2633_v32 = vmul.u32.u64.high %v2602_v1, %v1134_v45, %v2632_v31 }
 0x433   :  { %v1009_v35 = vor.u32 %v1008_v27, %v1007_v26  ;;  %v1011_v34 = vshrl.u32 %v2063_v11, %v1002_v44  ;;  %v1013_v37 = vshll.u32 %v2063_v11, %v1001_v42  ;;  %v1014_v13 = vshrl.u32 %v2064_v14, %v1002_v44 }
 0x434   :  { %v1017_v38 = vshrl.u32 %v2065_v17, %v1002_v44  ;;  %v1146_v22 = vmul.u32 %v2602_v1, %v1130_v36  ;;  %v1003_v40 = vshrl.u32 %v2060_v3, %v1002_v44  ;;  %v1016_v47 = vshll.u32 %v2064_v14, %v1001_v42 }
 0x435   :  { %v1012_v39 = vor.u32 %v1011_v34, %v1010_v54  ;;  %vm1148_vm4 = vc.u32 %v2629_v30, %v2632_v31  ;;  %v1149_v48 = vadd.s32 1, %v2633_v32  ;;  %v1015_v49 = vor.u32 %v1014_v13, %v1013_v37 }
 0x436   :  { %vm1019_vm5 = vcmp.lt.s32.totalorder %v2605_v50, 1  ;;  %v1018_v51 = vor.u32 %v1017_v38, %v1016_v47  ;;  %vm1021_vm6 = vcmp.lt.s32.totalorder %v2605_v50, 3  ;;  %vm1022_vm7 = vcmp.lt.s32.totalorder %v2605_v50, 4 }
 0x437   :  { %v1027_v61 = vsel %vm1019_vm5, %v1006_v33, %v1009_v35  ;;  %v1150_v1 = vsel %vm1148_vm4, %v1149_v48, %v2633_v32  ;;  %v1024_v53 = vsel %vm1022_vm7, %v1012_v39, 2102212464  ;;  %v1028_v57 = vsel %vm1022_vm7, %v1015_v49, 920167782 }
 0x438   :  { %v1031_v58 = vsel %vm1019_vm5, %v1009_v35, %v1012_v39  ;;  %v1151_v20 = vadd.s32 %v1150_v1, %v1146_v22  ;;  %vm1020_vm8 = vcmp.lt.s32.totalorder %v2605_v50, 2  ;;  %v1029_v42 = vsel %vm1021_vm6, %v1012_v39, %v1028_v57 }
 0x439   :  { %v1032_v63 = vsel %vm1022_vm7, %v1018_v51, 1326507024  ;;  %v1023_v52 = vsel %vm1019_vm5, %v1003_v40, %v1006_v33  ;;  %v1025_v60 = vsel %vm1021_vm6, %v1009_v35, %v1024_v53  ;;  %v1030_v4 = vsel %vm1020_vm8, %v1027_v61, %v1029_v42 }
 0x43a   :  { %v1033_v2 = vsel %vm1021_vm6, %v1015_v49, %v1032_v63  ;;  %v1152_v41 = vadd.s32 536870912, %v1151_v20  ;;  %v2650_v43 = vmul.u32.u64.low %v1035_v21, %v1030_v4  ;;  %v2651_v44 = vmul.u32.u64.high %v1035_v21, %v1030_v4, %v2650_v43 }
 0x43b   :  { %v1034_v0 = vsel %vm1020_vm8, %v1031_v58, %v1033_v2  ;;  %v1026_v59 = vsel %vm1020_vm8, %v1023_v52, %v1025_v60  ;;  %v1147_v32 = vadd.s32 %v2632_v31, %v2629_v30  ;;  %vm1183_vm3 = vweird.f32 %v2590_v25 }
 0x43c   :  { %v2653_v6 = vmul.u32.u64.low %v1035_v21, %v1034_v0  ;;  %v2654_v8 = vmul.u32.u64.high %v1035_v21, %v1034_v0, %v2653_v6  ;;  %v1153_v9 = vshrl.u32 %v1152_v41, 30  ;;  %v1045_v15 = vadd.s32 1, %v2651_v44 }
 0x43d   :  { %v1042_v50 = vmul.u32 %v1035_v21, %v1026_v59  ;;  %vm1079_vm7 = vweird.f32 %v2592_v19 }
 0x43e   :  { %v1154_v12 = vshll.u32 %v1153_v9, 30  ;;  %vm1044_vm9 = vc.u32 %v2654_v8, %v2650_v43  ;;  %v1043_v51 = vadd.s32 %v2650_v43, %v2654_v8  ;;  %v1177_v31 = vsub.s32 4, %v1153_v9 }
 0x43f   :  { %v1046_v10 = vsel %vm1044_vm9, %v1045_v15, %v2651_v44 }
 0x440   :  { %v1155_v29 = vsub.s32 %v1151_v20, %v1154_v12  ;;  %v1047_v55 = vadd.s32 %v1046_v10, %v1042_v50  ;;  %v1178_v60 = vsel %vm1093_vm12, %v1177_v31, %v1153_v9 }
 0x441   :  { %v1180_v43 = vsel %vm1092_vm13, 0, %v1178_v60 }
 0x442   :  { %v1157_v56 = vsub.s32 0, %v1155_v29  ;;  %v1048_v18 = vadd.s32 536870912, %v1047_v55  ;;  %v1184_v8 = vadd.s32 3, %v1180_v43 }
 0x444   :  { %v1596_v23 = vmin.u32 %v1157_v56, %v1155_v29  ;;  %v1049_v24 = vshrl.u32 %v1048_v18, 30  ;;  %v1185_v15 = vand.u32 3, %v1184_v8 }
 0x446   :  { %v1159_v26 = vclz %v1596_v23  ;;  %v1050_v36 = vshll.u32 %v1049_v24, 30  ;;  %v1073_v6 = vsub.s32 4, %v1049_v24  ;;  %vm1190_vm0 = vcmp.eq.s32.totalorder %v1185_v15, 2 }
 0x447   :  { %vm1187_vm1 = vcmp.eq.s32.totalorder %v1185_v15, 0  ;;  %vm1186_vm2 = vcmp.lt.s32.totalorder %v1185_v15, 2 }
 0x448   :  { %v1597_v45 = vadd.s32 4294967294, %v1159_v26  ;;  %v1051_v16 = vsub.s32 %v1047_v55, %v1050_v36  ;;  %v1074_v28 = vsel %vm989_vm14, %v1073_v6, %v1049_v24 }
 0x44a   :  { %vm1598_vm10 = vcmp.lt.s32.totalorder %v1597_v45, 0  ;;  %v1053_v62 = vsub.s32 0, %v1051_v16 }
 0x44b   :  { %v1162_v27 = vsel %vm1598_vm10, 0, %v1597_v45 }
 0x44c   :  { %v1163_v33 = vsub.s32 32, %v1162_v27  ;;  %v1167_v35 = vsub.s32 4294967266, %v1162_v27  ;;  %v1592_v54 = vmin.u32 %v1053_v62, %v1051_v16  ;;  %v1164_v34 = vshll.u32 %v1155_v29, %v1162_v27 }
 0x44d   :  { %v1076_v29 = vsel %vm988_vm15, 0, %v1074_v28 }
 0x44e   :  { %v1165_v37 = vshrl.u32 %v1147_v32, %v1163_v33  ;;  %v1168_v13 = vadd.s32 127, %v1167_v35  ;;  %v1055_v38 = vclz %v1592_v54  ;;  %v1080_v18 = vadd.s32 3, %v1076_v29 }
 0x450   :  { %v1166_v21 = vor.u32 %v1165_v37, %v1164_v34  ;;  %v1169_v22 = vshll.u32 %v1168_v13, 23  ;;  %v1593_v40 = vadd.s32 4294967294, %v1055_v38  ;;  %v1081_v36 = vand.u32 3, %v1080_v18  ;;  %v1615_v34 = vld [vmem:[%s2771_s4 + $0x3] ss:$0 sm:$0xff] }
 0x452   :  { %v1170_v39 = vor.u32 4788187, %v1169_v22  ;;  %vm1594_vm11 = vcmp.lt.s32.totalorder %v1593_v40, 0  ;;  %v1173_v48 = vcvt.s32.f32 %v1166_v21  ;;  %vm1086_vm4 = vcmp.eq.s32.totalorder %v1081_v36, 2 }
 0x453   :  { %v1058_v49 = vsel %vm1594_vm11, 0, %v1593_v40  ;;  %vm1083_vm5 = vcmp.eq.s32.totalorder %v1081_v36, 0  ;;  %vm1082_vm6 = vcmp.lt.s32.totalorder %v1081_v36, 2 }
 0x454   :  { %v1171_v47 = vand.u32 2147483647, %v1170_v39  ;;  %v1059_v61 = vsub.s32 32, %v1058_v49  ;;  %v1063_v1 = vsub.s32 4294967266, %v1058_v49  ;;  %v1060_v53 = vshll.u32 %v1051_v16, %v1058_v49 }
 0x456   :  { %v1174_v30 = vmul.f32 %v1173_v48, %v1171_v47  ;;  %v1061_v57 = vshrl.u32 %v1043_v51, %v1059_v61  ;;  %v1064_v58 = vadd.s32 127, %v1063_v1 }
 0x458   :  { %v1175_v20 = vxor.u32 2147483648, %v1174_v30  ;;  %v1062_v42 = vor.u32 %v1061_v57, %v1060_v53  ;;  %v1065_v63 = vshll.u32 %v1064_v58, 23 }
 0x45a   :  { %v1176_v52 = vsel %vm1093_vm12, %v1175_v20, %v1174_v30  ;;  %v1066_v2 = vor.u32 4788187, %v1065_v63  ;;  %v1069_v0 = vcvt.s32.f32 %v1062_v42 }
 0x45b   :  { %v1179_v4 = vsel %vm1092_vm13, %v2590_v25, %v1176_v52  ;;  %v12_v25 = vstv %s2772_s6 }
 0x45c   :  { %2042 = vcosq.f32 %v1179_v4  ;;  %v1067_v41 = vand.u32 2147483647, %v1066_v2  ;;  %13 = vst [vmem:[#allocation2] sm:$0x1] %v12_v25 }
 0x45d   :  { %2044 = vsinq.f32 %v1179_v4 }
 0x45e   :  { %v1070_v44 = vmul.f32 %v1069_v0, %v1067_v41 }
 0x460   :  { %v1071_v59 = vxor.u32 2147483648, %v1070_v44 }
 0x462   :  { %v1072_v12 = vsel %vm989_vm14, %v1071_v59, %v1070_v44 }
 0x463   :  { %v1075_v9 = vsel %vm988_vm15, %v2592_v19, %v1072_v12 }
 0x464   :  { %2046 = vcosq.f32 %v1075_v9 }
 0x465   :  { %2048 = vsinq.f32 %v1075_v9 }
 0x466   :  { %v2043_v50 = vpop.eup %2042 }
 0x467   :  { %v2045_v10 = vpop.eup %2044  ;;  %v1191_v55 = vxor.u32 2147483648, %v2043_v50 }
 0x468   :  { %v1188_v56 = vxor.u32 2147483648, %v2045_v10 }
 0x469   :  { %v1192_v23 = vsel %vm1190_vm0, %v1191_v55, %v2045_v10 }
 0x46a   :  { %v1189_v26 = vsel %vm1187_vm1, %v2043_v50, %v1188_v56 }
 0x46b   :  { %v1193_v46 = vsel %vm1186_vm2, %v1189_v26, %v1192_v23 }
 0x46c   :  { %v1194_v24 = vsel %vm1183_vm3, nan, %v1193_v46 }
 0x46e   :  { %v2047_v45 = vpop.eup %2046 }
 0x46f   :  { %v2049_v16 = vpop.eup %2048  ;;  %v1087_v27 = vxor.u32 2147483648, %v2047_v45 }
 0x470   :  { %v1084_v62 = vxor.u32 2147483648, %v2049_v16 }
 0x471   :  { %v1088_v32 = vsel %vm1086_vm4, %v1087_v27, %v2049_v16 }
 0x472   :  { %v1085_v33 = vsel %vm1083_vm5, %v2047_v45, %v1084_v62 }
 0x473   :  { %v1089_v35 = vsel %vm1082_vm6, %v1085_v33, %v1088_v32 }
 0x474   :  { %v1090_v54 = vsel %vm1079_vm7, nan, %v1089_v35 }
 0x475   :  { %1835 = vmatprep.mubr.f32.mxu1 %v1090_v54 }
 0x476   :  { %1836 = vmatmul.mubr.f32.vlgmr.msra.gmra.mrb[2].mxu1 %v1194_v24 }
 0x549   :  { %v1837_v37 = vpop.f32.mrb[2].mxu1 }
 0x54a   :  { %v2677_v13 = vadd.f32 %v1837_v37, %v1615_v34  ;;  %v1283_v38 = vpop.f32.mrb[3].mxu1 }
 0x54b   :  { %v2679_v21 = vadd.f32 %v1615_v34, %v1283_v38 }
 0x54c   :  { %v1396_v19 = vand.u32 2147483647, %v2677_v13  ;;  %v1399_v22 = vand.u32 2139095040, %v2677_v13  ;;  %vm1398_vm6 = vcmp.lt.s32.totalorder %v2677_v13, 0 }
 0x54d   :  { %v1295_v40 = vand.u32 2139095040, %v2679_v21  ;;  %v1292_v48 = vand.u32 2147483647, %v2679_v21 }
 0x54e   :  { %v1400_v39 = vshrl.u32 %v1399_v22, 23  ;;  %v1403_v47 = vand.u32 8388607, %v1396_v19  ;;  %vm1397_vm7 = vcmp.le.f32.partialorder %v1396_v19, 0.7853982 }
 0x54f   :  { %v1296_v49 = vshrl.u32 %v1295_v40, 23  ;;  %v1299_v31 = vand.u32 8388607, %v1292_v48 }
 0x550   :  { %v1620_v51 = vadd.s32 4294967169, %v1400_v39  ;;  %v1404_v30 = vor.u32 8388608, %v1403_v47 }
 0x551   :  { %v1616_v61 = vadd.s32 4294967169, %v1296_v49  ;;  %v1300_v52 = vor.u32 8388608, %v1299_v31 }
 0x552   :  { %v1406_v1 = vadd.s32 1, %v1620_v51  ;;  %v2689_v63 = vshll.u32 %v1404_v30, 8 }
 0x553   :  { %v1302_v53 = vadd.s32 1, %v1616_v61  ;;  %v1340_v31 = vshll.u32 %v1300_v52, 8 }
 0x554   :  { %vm1407_vm8 = vcmp.gt.s32.totalorder %v1406_v1, 0 }
 0x555   :  { %v1408_v57 = vsel %vm1407_vm8, %v1406_v1, 0  ;;  %vm1303_vm9 = vcmp.gt.s32.totalorder %v1302_v53, 0  ;;  %vm1294_vm8 = vcmp.lt.s32.totalorder %v2679_v21, 0 }
 0x556   :  { %v1409_v58 = vshrl.u32 %v1408_v57, 5  ;;  %v1410_v20 = vand.u32 31, %v1408_v57  ;;  %v1304_v42 = vsel %vm1303_vm9, %v1302_v53, 0  ;;  %vm1293_vm9 = vcmp.le.f32.partialorder %v1292_v48, 0.7853982 }
 0x557   :  { %v2692_v2 = vshrl.u32 %v1304_v42, 5  ;;  %v1306_v41 = vand.u32 31, %v1304_v42  ;;  %v1624_v48 = vld [vmem:[%s2773_s5] ss:$0 sm:$0xff] }
 0x558   :  { %v1411_v60 = vsub.s32 32, %v1410_v20  ;;  %v1413_v4 = vshll.u32 %v2060_v3, %v1410_v20  ;;  %v1416_v0 = vshll.u32 %v2061_v5, %v1410_v20  ;;  %v1419_v43 = vshll.u32 %v2062_v7, %v1410_v20 }
 0x559   :  { %v1422_v44 = vshll.u32 %v2063_v11, %v1410_v20  ;;  %v1425_v6 = vshll.u32 %v2064_v14, %v1410_v20  ;;  %vm1428_vm10 = vcmp.lt.s32.totalorder %v1409_v58, 1  ;;  %vm1429_vm11 = vcmp.lt.s32.totalorder %v1409_v58, 2 }
 0x55a   :  { %v1414_v8 = vshrl.u32 %v2061_v5, %v1411_v60  ;;  %v1417_v59 = vshrl.u32 %v2062_v7, %v1411_v60  ;;  %v1420_v12 = vshrl.u32 %v2063_v11, %v1411_v60  ;;  %v1412_v28 = vshrl.u32 %v2060_v3, %v1411_v60 }
 0x55b   :  { %v1423_v9 = vshrl.u32 %v2064_v14, %v1411_v60  ;;  %v1426_v15 = vshrl.u32 %v2065_v17, %v1411_v60  ;;  %v1307_v55 = vsub.s32 32, %v1306_v41  ;;  %vm1430_vm12 = vcmp.lt.s32.totalorder %v1409_v58, 3 }
 0x55c   :  { %v1415_v50 = vor.u32 %v1414_v8, %v1413_v4  ;;  %v1418_v29 = vor.u32 %v1417_v59, %v1416_v0  ;;  %v1421_v10 = vor.u32 %v1420_v12, %v1419_v43  ;;  %vm1431_vm13 = vcmp.lt.s32.totalorder %v1409_v58, 4 }
 0x55d   :  { %v1424_v56 = vor.u32 %v1423_v9, %v1422_v44  ;;  %v1427_v18 = vor.u32 %v1426_v15, %v1425_v6  ;;  %v1309_v27 = vshll.u32 %v2060_v3, %v1306_v41  ;;  %v1310_v33 = vshrl.u32 %v2061_v5, %v1307_v55 }
 0x55e   :  { %v1432_v23 = vsel %vm1428_vm10, %v1412_v28, %v1415_v50  ;;  %v1433_v26 = vsel %vm1431_vm13, %v1421_v10, 2102212464  ;;  %v1436_v46 = vsel %vm1428_vm10, %v1415_v50, %v1418_v29  ;;  %v1440_v24 = vsel %vm1428_vm10, %v1418_v29, %v1421_v10 }
 0x55f   :  { %v1434_v36 = vsel %vm1430_vm12, %v1418_v29, %v1433_v26  ;;  %v1437_v45 = vsel %vm1431_vm13, %v1424_v56, 920167782  ;;  %v1441_v16 = vsel %vm1431_vm13, %v1427_v18, 1326507024  ;;  %v1312_v35 = vshll.u32 %v2061_v5, %v1306_v41 }
 0x560   :  { %v1438_v62 = vsel %vm1430_vm12, %v1421_v10, %v1437_v45  ;;  %v1442_v32 = vsel %vm1430_vm12, %v1424_v56, %v1441_v16  ;;  %v1435_v54 = vsel %vm1429_vm11, %v1432_v23, %v1434_v36  ;;  %v1313_v37 = vshrl.u32 %v2062_v7, %v1307_v55 }
 0x561   :  { %v1439_v25 = vsel %vm1429_vm11, %v1436_v46, %v1438_v62  ;;  %v1443_v34 = vsel %vm1429_vm11, %v1440_v24, %v1442_v32  ;;  %v1311_v47 = vor.u32 %v1310_v33, %v1309_v27  ;;  %v1315_v5 = vshll.u32 %v2062_v7, %v1306_v41 }
 0x562   :  { %v2715_v38 = vmul.u32.u64.low %v2689_v63, %v1443_v34  ;;  %v2716_v22 = vmul.u32.u64.high %v2689_v63, %v1443_v34, %v2715_v38  ;;  %v2719_v40 = vmul.u32.u64.low %v2689_v63, %v1439_v25  ;;  %v2720_v39 = vmul.u32.u64.high %v2689_v63, %v1439_v25, %v2719_v40 }
 0x563   :  { %v1314_v49 = vor.u32 %v1313_v37, %v1312_v35  ;;  %v1316_v51 = vshrl.u32 %v2063_v11, %v1307_v55  ;;  %v1318_v61 = vshll.u32 %v2063_v11, %v1306_v41  ;;  %v1319_v1 = vshrl.u32 %v2064_v14, %v1307_v55 }
 0x564   :  { %v1322_v30 = vshrl.u32 %v2065_v17, %v1307_v55  ;;  %v1451_v53 = vmul.u32 %v2689_v63, %v1435_v54  ;;  %v1308_v57 = vshrl.u32 %v2060_v3, %v1307_v55  ;;  %v1321_v20 = vshll.u32 %v2064_v14, %v1306_v41 }
 0x565   :  { %v1317_v58 = vor.u32 %v1316_v51, %v1315_v5  ;;  %vm1453_vm14 = vc.u32 %v2716_v22, %v2719_v40  ;;  %v1454_v7 = vadd.s32 1, %v2720_v39  ;;  %v1320_v42 = vor.u32 %v1319_v1, %v1318_v61 }
 0x566   :  { %vm1324_vm15 = vcmp.lt.s32.totalorder %v2692_v2, 1  ;;  %v1323_v11 = vor.u32 %v1322_v30, %v1321_v20  ;;  %vm1326_vm0 = vcmp.lt.s32.totalorder %v2692_v2, 3  ;;  %vm1327_vm1 = vcmp.lt.s32.totalorder %v2692_v2, 4 }
 0x567   :  { %v1332_v17 = vsel %vm1324_vm15, %v1311_v47, %v1314_v49  ;;  %v1455_v63 = vsel %vm1453_vm14, %v1454_v7, %v2720_v39  ;;  %v1329_v52 = vsel %vm1327_vm1, %v1317_v58, 2102212464  ;;  %v1333_v3 = vsel %vm1327_vm1, %v1320_v42, 920167782 }
 0x568   :  { %v1336_v60 = vsel %vm1324_vm15, %v1314_v49, %v1317_v58  ;;  %v1456_v4 = vadd.s32 %v1455_v63, %v1451_v53  ;;  %vm1325_vm2 = vcmp.lt.s32.totalorder %v2692_v2, 2  ;;  %v1334_v14 = vsel %vm1326_vm0, %v1317_v58, %v1333_v3 }
 0x569   :  { %v1337_v41 = vsel %vm1327_vm1, %v1323_v11, 1326507024  ;;  %v1328_v0 = vsel %vm1324_vm15, %v1308_v57, %v1311_v47  ;;  %v1330_v43 = vsel %vm1326_vm0, %v1314_v49, %v1329_v52  ;;  %v1335_v44 = vsel %vm1325_vm2, %v1332_v17, %v1334_v14 }
 0x56a   :  { %v1338_v6 = vsel %vm1326_vm0, %v1320_v42, %v1337_v41  ;;  %v1457_v8 = vadd.s32 536870912, %v1456_v4  ;;  %v2737_v12 = vmul.u32.u64.low %v1340_v31, %v1335_v44  ;;  %v2738_v28 = vmul.u32.u64.high %v1340_v31, %v1335_v44, %v2737_v12 }
 0x56b   :  { %v1339_v59 = vsel %vm1325_vm2, %v1336_v60, %v1338_v6  ;;  %v1331_v29 = vsel %vm1325_vm2, %v1328_v0, %v1330_v43  ;;  %v1452_v35 = vadd.s32 %v2719_v40, %v2716_v22  ;;  %vm1488_vm13 = vweird.f32 %v2677_v13 }
 0x56c   :  { %v2740_v9 = vmul.u32.u64.low %v1340_v31, %v1339_v59  ;;  %v2741_v15 = vmul.u32.u64.high %v1340_v31, %v1339_v59, %v2740_v9  ;;  %v1458_v50 = vshrl.u32 %v1457_v8, 30  ;;  %v1350_v55 = vadd.s32 1, %v2738_v28 }
 0x56d   :  { %v1347_v2 = vmul.u32 %v1340_v31, %v1331_v29  ;;  %vm1384_vm1 = vweird.f32 %v2679_v21  ;;  %vm1522_vm2 = vcmask 7168  }
 0x56e   :  { %v1459_v10 = vshll.u32 %v1458_v50, 30  ;;  %vm1349_vm3 = vc.u32 %v2741_v15, %v2737_v12  ;;  %v1348_v53 = vadd.s32 %v2737_v12, %v2741_v15  ;;  %v1482_v40 = vsub.s32 4, %v1458_v50 }
 0x56f   :  { %v1351_v18 = vsel %vm1349_vm3, %v1350_v55, %v2738_v28 }
 0x570   :  { %v1460_v56 = vsub.s32 %v1456_v4, %v1459_v10  ;;  %v1352_v23 = vadd.s32 %v1351_v18, %v1347_v2  ;;  %v1483_v3 = vsel %vm1398_vm6, %v1482_v40, %v1458_v50 }
 0x571   :  { %v1485_v0 = vsel %vm1397_vm7, 0, %v1483_v3 }
 0x572   :  { %v1462_v26 = vsub.s32 0, %v1460_v56  ;;  %v1353_v46 = vadd.s32 536870912, %v1352_v23  ;;  %v1489_v6 = vadd.s32 3, %v1485_v0 }
 0x574   :  { %v1621_v24 = vmin.u32 %v1462_v26, %v1460_v56  ;;  %v1354_v36 = vshrl.u32 %v1353_v46, 30  ;;  %v1490_v12 = vand.u32 3, %v1489_v6 }
 0x576   :  { %v1464_v45 = vclz %v1621_v24  ;;  %v1355_v16 = vshll.u32 %v1354_v36, 30  ;;  %v1378_v44 = vsub.s32 4, %v1354_v36  ;;  %vm1495_vm10 = vcmp.eq.s32.totalorder %v1490_v12, 2 }
 0x577   :  { %vm1492_vm11 = vcmp.eq.s32.totalorder %v1490_v12, 0  ;;  %vm1491_vm12 = vcmp.lt.s32.totalorder %v1490_v12, 2 }
 0x578   :  { %v1622_v27 = vadd.s32 4294967294, %v1464_v45  ;;  %v1356_v62 = vsub.s32 %v1352_v23, %v1355_v16  ;;  %v1379_v19 = vsel %vm1294_vm8, %v1378_v44, %v1354_v36 }
 0x579   :  { %v1381_v15 = vsel %vm1293_vm9, 0, %v1379_v19 }
 0x57a   :  { %vm1623_vm4 = vcmp.lt.s32.totalorder %v1622_v27, 0  ;;  %v1358_v33 = vsub.s32 0, %v1356_v62  ;;  %v1385_v2 = vadd.s32 3, %v1381_v15 }
 0x57b   :  { %v1467_v32 = vsel %vm1623_vm4, 0, %v1622_v27 }
 0x57c   :  { %v1468_v54 = vsub.s32 32, %v1467_v32  ;;  %v1472_v25 = vsub.s32 4294967266, %v1467_v32  ;;  %v1617_v34 = vmin.u32 %v1358_v33, %v1356_v62  ;;  %v1469_v37 = vshll.u32 %v1460_v56, %v1467_v32 }
 0x57d   :  { %v1386_v46 = vand.u32 3, %v1385_v2 }
 0x57e   :  { %v1470_v38 = vshrl.u32 %v1452_v35, %v1468_v54  ;;  %v1473_v39 = vadd.s32 127, %v1472_v25  ;;  %v1360_v47 = vclz %v1617_v34 }
 0x57f   :  { %vm1391_vm14 = vcmp.eq.s32.totalorder %v1386_v46, 2  ;;  %vm1388_vm15 = vcmp.eq.s32.totalorder %v1386_v46, 0  ;;  %vm1387_vm0 = vcmp.lt.s32.totalorder %v1386_v46, 2 }
 0x580   :  { %v1471_v49 = vor.u32 %v1470_v38, %v1469_v37  ;;  %v1474_v5 = vshll.u32 %v1473_v39, 23  ;;  %v1618_v51 = vadd.s32 4294967294, %v1360_v47 }
 0x582   :  { %v1475_v61 = vor.u32 4788187, %v1474_v5  ;;  %vm1619_vm5 = vcmp.lt.s32.totalorder %v1618_v51, 0  ;;  %v1478_v30 = vcvt.s32.f32 %v1471_v49 }
 0x583   :  { %v1363_v31 = vsel %vm1619_vm5, 0, %v1618_v51 }
 0x584   :  { %v1476_v1 = vand.u32 2147483647, %v1475_v61  ;;  %v1364_v57 = vsub.s32 32, %v1363_v31  ;;  %v1368_v58 = vsub.s32 4294967266, %v1363_v31  ;;  %v1365_v20 = vshll.u32 %v1356_v62, %v1363_v31 }
 0x586   :  { %v1479_v22 = vmul.f32 %v1478_v30, %v1476_v1  ;;  %v1366_v7 = vshrl.u32 %v1348_v53, %v1364_v57  ;;  %v1369_v42 = vadd.s32 127, %v1368_v58 }
 0x588   :  { %v1480_v11 = vxor.u32 2147483648, %v1479_v22  ;;  %v1367_v17 = vor.u32 %v1366_v7, %v1365_v20  ;;  %v1370_v63 = vshll.u32 %v1369_v42, 23 }
 0x58a   :  { %v1481_v52 = vsel %vm1398_vm6, %v1480_v11, %v1479_v22  ;;  %v1371_v60 = vor.u32 4788187, %v1370_v63  ;;  %v1374_v41 = vcvt.s32.f32 %v1367_v17 }
 0x58b   :  { %v1484_v4 = vsel %vm1397_vm7, %v2677_v13, %v1481_v52  ;;  %v1625_v13 = vld [vmem:[#allocation2] ss:$0 sm:$0xff] }
 0x58c   :  { %2050 = vcosq.f32 %v1484_v4  ;;  %v1372_v14 = vand.u32 2147483647, %v1371_v60 }
 0x58d   :  { %2052 = vsinq.f32 %v1484_v4 }
 0x58e   :  { %v1375_v43 = vmul.f32 %v1374_v41, %v1372_v14 }
 0x590   :  { %v1376_v8 = vxor.u32 2147483648, %v1375_v43 }
 0x592   :  { %v1377_v59 = vsel %vm1294_vm8, %v1376_v8, %v1375_v43 }
 0x593   :  { %v1380_v28 = vsel %vm1293_vm9, %v2679_v21, %v1377_v59 }
 0x594   :  { %2054 = vcosq.f32 %v1380_v28 }
 0x595   :  { %2056 = vsinq.f32 %v1380_v28 }
 0x596   :  { %v2051_v9 = vpop.eup %2050 }
 0x597   :  { %v2053_v50 = vpop.eup %2052  ;;  %v1496_v29 = vxor.u32 2147483648, %v2051_v9 }
 0x598   :  { %v1493_v10 = vxor.u32 2147483648, %v2053_v50 }
 0x599   :  { %v1497_v55 = vsel %vm1495_vm10, %v1496_v29, %v2053_v50 }
 0x59a   :  { %v1494_v56 = vsel %vm1492_vm11, %v2051_v9, %v1493_v10 }
 0x59b   :  { %v1498_v18 = vsel %vm1491_vm12, %v1494_v56, %v1497_v55 }
 0x59c   :  { %v1499_v23 = vsel %vm1488_vm13, nan, %v1498_v18 }
 0x59d   :  { %v1508_v26 = vmul.f32 %v1624_v48, %v1499_v23 }
 0x59e   :  { %v2055_v24 = vpop.eup %2054 }
 0x59f   :  { %1511 = vadd.xlane.f32.xlu0 %v1508_v26  ;;  %v2057_v36 = vpop.eup %2056  ;;  %v1392_v45 = vxor.u32 2147483648, %v2055_v24 }
 0x5a0   :  { %v1389_v16 = vxor.u32 2147483648, %v2057_v36 }
 0x5a1   :  { %v1393_v27 = vsel %vm1391_vm14, %v1392_v45, %v2057_v36 }
 0x5a2   :  { %v1390_v62 = vsel %vm1388_vm15, %v2055_v24, %v1389_v16 }
 0x5a3   :  { %v1394_v32 = vsel %vm1387_vm0, %v1390_v62, %v1393_v27 }
 0x5a4   :  { %v1395_v33 = vsel %vm1384_vm1, nan, %v1394_v32 }
 0x5a5   :  { %v1507_v35 = vmul.f32 %v1624_v48, %v1395_v33 }
 0x5a7   :  { %1509 = vadd.xlane.f32.xlu1 %v1507_v35 }
 0x62c   :  { %v1512_v54 = vpop.xlane.xlu0 %1511 }
 0x62d   :  { %v1521_v25 = vadd.f32 %v1625_v13, %v1512_v54 }
 0x62f   :  { %1524 = vst.msk [vmem:[%s2774_s7 + $0x8] sm:$0xff] %vm1522_vm2, %v1521_v25 }
 0x634   :  { %v1510_v34 = vpop.xlane.xlu1 %1509 }
 0x635   :  { %v1520_v37 = vadd.f32 %v1625_v13, %v1510_v34 }
 0x637   :  { %1523 = vst.msk [vmem:[%s2774_s7] sm:$0xff] %vm1522_vm2, %v1520_v37 }

</bundles_post_ra>
